<compile_context>
chip_gen: v7x
topology: tpu7x:2x2x1
jax: 0.10.0
libtpu: 0.0.40
codegen_flags: <defaults>
</compile_context>

<pallas_src>
import jax
import jax.numpy as jnp
from jax.experimental import pallas as pl
from jax.experimental.pallas import tpu as pltpu

# Conservative across generations: v5e/v6e have 128 MiB physical VMEM
# (16/32 MiB default scoped), v7x has 64 MiB physical (32 MiB scoped).
_VMEM_LIMIT_BYTES = 40 * 1024 * 1024
_TILE_BUDGET_BYTES = 24 * 1024 * 1024


def _resblock_kernel(x_ref, w_ref, b_ref, o_ref, xp_ref):
    """One (batch, channel-tile) block of depthwise 3x3 conv + bias + residual.

    x_ref : (1, H, W, Ct)   input block, channels-last (Ct on lanes)
    w_ref : (3, 3, Ct)      f32 taps; center tap already has +1 folded in (residual)
    b_ref : (1, Ct)         f32 conv bias (zeros when the conv has bias=False)
    o_ref : (1, H, W, Ct)
    xp_ref: (H+2, W+2, Ct)  f32 VMEM scratch: zero-halo padded plane
    """
    H, W, Ct = x_ref.shape[1], x_ref.shape[2], x_ref.shape[3]
    Hp, Wp = H + 2, W + 2

    # Zero the 1-px halo ring (== Conv2d padding=1) and stage the block at
    # offset (1, 1).  The ring is re-zeroed every block so the kernel stays
    # correct under megacore grid sharding (each TC has its own scratch); the
    # ring is tiny compared to the 9-tap compute.
    xp_ref[0:1, :, :] = jnp.zeros((1, Wp, Ct), jnp.float32)
    xp_ref[Hp - 1:Hp, :, :] = jnp.zeros((1, Wp, Ct), jnp.float32)
    xp_ref[1:Hp - 1, 0:1, :] = jnp.zeros((H, 1, Ct), jnp.float32)
    xp_ref[1:Hp - 1, Wp - 1:Wp, :] = jnp.zeros((H, 1, Ct), jnp.float32)
    xp_ref[1:Hp - 1, 1:Wp - 1, :] = x_ref[0].astype(jnp.float32)  # cast once into scratch

    wv = w_ref[...]                      # (3, 3, Ct) f32, tiny
    acc = None
    for dh in range(3):                  # unrolled 9-tap multiply-add on the VPU
        for dw in range(3):
            tap = wv[dh:dh + 1, dw:dw + 1, :]             # (1, 1, Ct) per-lane taps
            term = xp_ref[dh:dh + H, dw:dw + W, :] * tap  # dh: outer offset, dw: sublane shift
            acc = term if acc is None else acc + term
    acc = acc + b_ref[...].reshape(1, 1, Ct)              # bias broadcast over (H, W)
    o_ref[0] = acc.astype(o_ref.dtype)


def _valid_c_tiles(C):
    """Channel tiles allowed by the (8,128) block constraint: C itself, or a
    multiple of 128 that divides C.  Sorted largest-first."""
    cands = {C}
    d = 128
    while d < C:
        if C % d == 0:
            cands.add(d)
        d += 128
    return sorted(cands, reverse=True)


def _pick_c_tile(C, H, W, itemsize, N, budget_bytes=_TILE_BUDGET_BYTES):
    """Largest valid channel tile whose double-buffered I/O blocks + f32 padded
    scratch + f32 accumulator fit the VMEM budget.  When N == 1, prefer a tile
    that leaves >= 2 parallel grid steps (v7x has 2 TensorCores)."""
    def usage(ct):
        io = H * W * ct * itemsize * 2 * 2                # in + out blocks, double-buffered
        pad = (H + 2) * (W + 2) * ct * 4                  # f32 padded scratch plane
        acc = H * W * ct * 4                              # f32 accumulator live value
        return io + pad + acc

    cands = _valid_c_tiles(C)
    fitting = [ct for ct in cands if usage(ct) <= budget_bytes]
    if not fitting:
        # TODO(synk): spatial H tiling for huge planes; fall back to smallest valid tile.
        return cands[-1]
    if N == 1:
        multi = [ct for ct in fitting if C // ct >= 2]
        if multi:
            return multi[0]
    return fitting[0]


def res_block_nhwc(x_nhwc, weight, bias=None):
    """Core kernel entry, channels-last.  x_nhwc: (N, H, W, C)."""
    N, H, W, C = x_nhwc.shape
    w = weight.reshape(C, 3, 3).astype(jnp.float32)
    w = w.at[:, 1, 1].add(1.0)                    # fold residual into the center tap
    w = jnp.transpose(w, (1, 2, 0))               # (3, 3, C): channels on lanes
    if bias is None:
        b = jnp.zeros((1, C), jnp.float32)
    else:
        b = bias.reshape(1, C).astype(jnp.float32)

    c_tile = _pick_c_tile(C, H, W, x_nhwc.dtype.itemsize, N)
    grid = (N, C // c_tile)

    return pl.pallas_call(
        _resblock_kernel,
        out_shape=jax.ShapeDtypeStruct((N, H, W, C), x_nhwc.dtype),
        grid_spec=pltpu.PrefetchScalarGridSpec(
            num_scalar_prefetch=0,
            grid=grid,
            in_specs=[
                pl.BlockSpec((1, H, W, c_tile), lambda n, c: (n, 0, 0, c)),
                pl.BlockSpec((3, 3, c_tile), lambda n, c: (0, 0, c)),
                pl.BlockSpec((1, c_tile), lambda n, c: (0, c)),
            ],
            out_specs=pl.BlockSpec((1, H, W, c_tile), lambda n, c: (n, 0, 0, c)),
            scratch_shapes=[pltpu.VMEM((H + 2, W + 2, c_tile), jnp.float32)],
        ),
        compiler_params=pltpu.CompilerParams(
            dimension_semantics=("parallel", "parallel"),
            vmem_limit_bytes=_VMEM_LIMIT_BYTES),
    )(x_nhwc, w, b)


def res_block(x, weight, bias=None):
    """PyTorch-compatible ResBlock forward.

    x:      (N, C, H, W)
    weight: (C, 1, 3, 3) depthwise conv weight (or (C, 3, 3))
    bias:   (C,) or None
    """
    x_nhwc = jnp.transpose(x, (0, 2, 3, 1))       # layout plumbing (module boundary)
    out = res_block_nhwc(x_nhwc, weight, bias)
    return jnp.transpose(out, (0, 3, 1, 2))


def res_block_ref(x, weight, bias=None):
    """Pure-JAX reference: depthwise conv (padding=1, groups=C) + bias + residual."""
    N, C, H, W = x.shape
    w = weight.reshape(C, 1, 3, 3)
    out = jax.lax.conv_general_dilated(
        x, w, window_strides=(1, 1), padding=((1, 1), (1, 1)),
        dimension_numbers=('NCHW', 'OIHW', 'NCHW'),
        feature_group_count=C,
        precision=jax.lax.Precision.HIGHEST)
    if bias is not None:
        out = out + bias[None, :, None, None]
    return out + x


if __name__ == "__main__":
    key = jax.random.PRNGKey(0)
    k_x, k_w, k_b = jax.random.split(key, 3)

    N, C, H, W = 2, 4, 16, 16
    x = jax.random.normal(k_x, (N, C, H, W), dtype=jnp.float32)
    # nn.Conv2d(C, C, 3, padding=1, groups=C): weight (C, 1, 3, 3), bias (C,)
    weight = jax.random.normal(k_w, (C, 1, 3, 3), dtype=jnp.float32) * 0.1
    bias = jax.random.normal(k_b, (C,), dtype=jnp.float32) * 0.1

    # With bias (ResBlock(bias=True))
    out = jax.block_until_ready(res_block(x, weight, bias))
    ref = res_block_ref(x, weight, bias)
    assert out.shape == (N, C, H, W)
    assert jnp.allclose(out, ref, atol=1e-5, rtol=1e-5), "mismatch vs reference (bias)"

    # Without bias (ResBlock(bias=False))
    out_nb = jax.block_until_ready(res_block(x, weight, None))
    ref_nb = res_block_ref(x, weight, None)
    assert jnp.allclose(out_nb, ref_nb, atol=1e-5, rtol=1e-5), "mismatch vs reference (no bias)"

    print("KERNEL_OK")
</pallas_src>

<mosaic_0001>
module attributes {stable_mosaic.version = 11 : i64} {
  func.func @_resblock_kernel(%arg0: i32, %arg1: i32, %arg2: memref<1x16x16x4xf32, #tpu.memory_space<vmem>>, %arg3: memref<3x3x4xf32, #tpu.memory_space<vmem>>, %arg4: memref<1x4xf32, #tpu.memory_space<vmem>>, %arg5: memref<1x16x16x4xf32, #tpu.memory_space<vmem>>, %arg6: memref<18x18x4xf32, #tpu.memory_space<vmem>>) attributes {dimension_semantics = [#tpu.dimension_semantics<parallel>, #tpu.dimension_semantics<parallel>], iteration_bounds = array<i64: 2, 1>, scalar_prefetch = 0 : i64, scratch_operands = 1 : i64, tpu.core_type = #tpu.core_type<tc>, window_params = [{transform_indices = @transform_0, window_bounds = array<i64: 1, 16, 16, 4>}, {transform_indices = @transform_1, window_bounds = array<i64: 3, 3, 4>}, {transform_indices = @transform_2, window_bounds = array<i64: 1, 4>}, {transform_indices = @transform_3, window_bounds = array<i64: 1, 16, 16, 4>}]} {
    %cst = arith.constant 0.000000e+00 : f32
    %0 = vector.broadcast %cst : f32 to vector<1x18x4xf32>
    %c0 = arith.constant 0 : index
    %c0_0 = arith.constant 0 : index
    %c0_1 = arith.constant 0 : index
    %1 = vector.load %arg6[%c0, %c0_0, %c0_1] : memref<18x18x4xf32, #tpu.memory_space<vmem>>, vector<1x18x4xf32>
    tpu.vector_store %arg6[%c0, %c0_0, %c0_1], %0 {strides = array<i32>} : memref<18x18x4xf32, #tpu.memory_space<vmem>>, vector<1x18x4xf32>,
    %cst_2 = arith.constant 0.000000e+00 : f32
    %2 = vector.broadcast %cst_2 : f32 to vector<1x18x4xf32>
    %c17 = arith.constant 17 : index
    %c0_3 = arith.constant 0 : index
    %c0_4 = arith.constant 0 : index
    %3 = vector.load %arg6[%c17, %c0_3, %c0_4] : memref<18x18x4xf32, #tpu.memory_space<vmem>>, vector<1x18x4xf32>
    tpu.vector_store %arg6[%c17, %c0_3, %c0_4], %2 {strides = array<i32>} : memref<18x18x4xf32, #tpu.memory_space<vmem>>, vector<1x18x4xf32>,
    %cst_5 = arith.constant 0.000000e+00 : f32
    %4 = vector.broadcast %cst_5 : f32 to vector<16x1x4xf32>
    %c1 = arith.constant 1 : index
    %c0_6 = arith.constant 0 : index
    %c0_7 = arith.constant 0 : index
    %5 = vector.load %arg6[%c1, %c0_6, %c0_7] : memref<18x18x4xf32, #tpu.memory_space<vmem>>, vector<16x1x4xf32>
    tpu.vector_store %arg6[%c1, %c0_6, %c0_7], %4 {strides = array<i32>} : memref<18x18x4xf32, #tpu.memory_space<vmem>>, vector<16x1x4xf32>,
    %cst_8 = arith.constant 0.000000e+00 : f32
    %6 = vector.broadcast %cst_8 : f32 to vector<16x1x4xf32>
    %c1_9 = arith.constant 1 : index
    %c17_10 = arith.constant 17 : index
    %c0_11 = arith.constant 0 : index
    %7 = vector.load %arg6[%c1_9, %c17_10, %c0_11] : memref<18x18x4xf32, #tpu.memory_space<vmem>>, vector<16x1x4xf32>
    tpu.vector_store %arg6[%c1_9, %c17_10, %c0_11], %6 {strides = array<i32>} : memref<18x18x4xf32, #tpu.memory_space<vmem>>, vector<16x1x4xf32>,
    %c0_12 = arith.constant 0 : index
    %c0_13 = arith.constant 0 : index
    %c0_14 = arith.constant 0 : index
    %c0_15 = arith.constant 0 : index
    %8 = vector.load %arg2[%c0_12, %c0_13, %c0_14, %c0_15] : memref<1x16x16x4xf32, #tpu.memory_space<vmem>>, vector<1x16x16x4xf32>
    %9 = vector.shape_cast %8 : vector<1x16x16x4xf32> to vector<16x16x4xf32>
    %c1_16 = arith.constant 1 : index
    %c1_17 = arith.constant 1 : index
    %c0_18 = arith.constant 0 : index
    %10 = vector.load %arg6[%c1_16, %c1_17, %c0_18] : memref<18x18x4xf32, #tpu.memory_space<vmem>>, vector<16x16x4xf32>
    tpu.vector_store %arg6[%c1_16, %c1_17, %c0_18], %9 {strides = array<i32>} : memref<18x18x4xf32, #tpu.memory_space<vmem>>, vector<16x16x4xf32>,
    %c0_19 = arith.constant 0 : index
    %c0_20 = arith.constant 0 : index
    %c0_21 = arith.constant 0 : index
    %11 = vector.load %arg3[%c0_19, %c0_20, %c0_21] : memref<3x3x4xf32, #tpu.memory_space<vmem>>, vector<3x3x4xf32>
    %12 = vector.extract_strided_slice %11 {offsets = [0, 0, 0], sizes = [1, 1, 4], strides = [1, 1, 1]} : vector<3x3x4xf32> to vector<1x1x4xf32>
    %c0_22 = arith.constant 0 : index
    %c0_23 = arith.constant 0 : index
    %c0_24 = arith.constant 0 : index
    %13 = vector.load %arg6[%c0_22, %c0_23, %c0_24] : memref<18x18x4xf32, #tpu.memory_space<vmem>>, vector<16x16x4xf32>
    %14 = vector.broadcast %12 : vector<1x1x4xf32> to vector<16x16x4xf32>
    %15 = arith.mulf %13, %14 : vector<16x16x4xf32>
    %16 = vector.extract_strided_slice %11 {offsets = [0, 1, 0], sizes = [1, 1, 4], strides = [1, 1, 1]} : vector<3x3x4xf32> to vector<1x1x4xf32>
    %c0_25 = arith.constant 0 : index
    %c1_26 = arith.constant 1 : index
    %c0_27 = arith.constant 0 : index
    %17 = vector.load %arg6[%c0_25, %c1_26, %c0_27] : memref<18x18x4xf32, #tpu.memory_space<vmem>>, vector<16x16x4xf32>
    %18 = vector.broadcast %16 : vector<1x1x4xf32> to vector<16x16x4xf32>
    %19 = arith.mulf %17, %18 : vector<16x16x4xf32>
    %20 = arith.addf %15, %19 : vector<16x16x4xf32>
    %21 = vector.extract_strided_slice %11 {offsets = [0, 2, 0], sizes = [1, 1, 4], strides = [1, 1, 1]} : vector<3x3x4xf32> to vector<1x1x4xf32>
    %c0_28 = arith.constant 0 : index
    %c2 = arith.constant 2 : index
    %c0_29 = arith.constant 0 : index
    %22 = vector.load %arg6[%c0_28, %c2, %c0_29] : memref<18x18x4xf32, #tpu.memory_space<vmem>>, vector<16x16x4xf32>
    %23 = vector.broadcast %21 : vector<1x1x4xf32> to vector<16x16x4xf32>
    %24 = arith.mulf %22, %23 : vector<16x16x4xf32>
    %25 = arith.addf %20, %24 : vector<16x16x4xf32>
    %26 = vector.extract_strided_slice %11 {offsets = [1, 0, 0], sizes = [1, 1, 4], strides = [1, 1, 1]} : vector<3x3x4xf32> to vector<1x1x4xf32>
    %c1_30 = arith.constant 1 : index
    %c0_31 = arith.constant 0 : index
    %c0_32 = arith.constant 0 : index
    %27 = vector.load %arg6[%c1_30, %c0_31, %c0_32] : memref<18x18x4xf32, #tpu.memory_space<vmem>>, vector<16x16x4xf32>
    %28 = vector.broadcast %26 : vector<1x1x4xf32> to vector<16x16x4xf32>
    %29 = arith.mulf %27, %28 : vector<16x16x4xf32>
    %30 = arith.addf %25, %29 : vector<16x16x4xf32>
    %31 = vector.extract_strided_slice %11 {offsets = [1, 1, 0], sizes = [1, 1, 4], strides = [1, 1, 1]} : vector<3x3x4xf32> to vector<1x1x4xf32>
    %c1_33 = arith.constant 1 : index
    %c1_34 = arith.constant 1 : index
    %c0_35 = arith.constant 0 : index
    %32 = vector.load %arg6[%c1_33, %c1_34, %c0_35] : memref<18x18x4xf32, #tpu.memory_space<vmem>>, vector<16x16x4xf32>
    %33 = vector.broadcast %31 : vector<1x1x4xf32> to vector<16x16x4xf32>
    %34 = arith.mulf %32, %33 : vector<16x16x4xf32>
    %35 = arith.addf %30, %34 : vector<16x16x4xf32>
    %36 = vector.extract_strided_slice %11 {offsets = [1, 2, 0], sizes = [1, 1, 4], strides = [1, 1, 1]} : vector<3x3x4xf32> to vector<1x1x4xf32>
    %c1_36 = arith.constant 1 : index
    %c2_37 = arith.constant 2 : index
    %c0_38 = arith.constant 0 : index
    %37 = vector.load %arg6[%c1_36, %c2_37, %c0_38] : memref<18x18x4xf32, #tpu.memory_space<vmem>>, vector<16x16x4xf32>
    %38 = vector.broadcast %36 : vector<1x1x4xf32> to vector<16x16x4xf32>
    %39 = arith.mulf %37, %38 : vector<16x16x4xf32>
    %40 = arith.addf %35, %39 : vector<16x16x4xf32>
    %41 = vector.extract_strided_slice %11 {offsets = [2, 0, 0], sizes = [1, 1, 4], strides = [1, 1, 1]} : vector<3x3x4xf32> to vector<1x1x4xf32>
    %c2_39 = arith.constant 2 : index
    %c0_40 = arith.constant 0 : index
    %c0_41 = arith.constant 0 : index
    %42 = vector.load %arg6[%c2_39, %c0_40, %c0_41] : memref<18x18x4xf32, #tpu.memory_space<vmem>>, vector<16x16x4xf32>
    %43 = vector.broadcast %41 : vector<1x1x4xf32> to vector<16x16x4xf32>
    %44 = arith.mulf %42, %43 : vector<16x16x4xf32>
    %45 = arith.addf %40, %44 : vector<16x16x4xf32>
    %46 = vector.extract_strided_slice %11 {offsets = [2, 1, 0], sizes = [1, 1, 4], strides = [1, 1, 1]} : vector<3x3x4xf32> to vector<1x1x4xf32>
    %c2_42 = arith.constant 2 : index
    %c1_43 = arith.constant 1 : index
    %c0_44 = arith.constant 0 : index
    %47 = vector.load %arg6[%c2_42, %c1_43, %c0_44] : memref<18x18x4xf32, #tpu.memory_space<vmem>>, vector<16x16x4xf32>
    %48 = vector.broadcast %46 : vector<1x1x4xf32> to vector<16x16x4xf32>
    %49 = arith.mulf %47, %48 : vector<16x16x4xf32>
    %50 = arith.addf %45, %49 : vector<16x16x4xf32>
    %51 = vector.extract_strided_slice %11 {offsets = [2, 2, 0], sizes = [1, 1, 4], strides = [1, 1, 1]} : vector<3x3x4xf32> to vector<1x1x4xf32>
    %c2_45 = arith.constant 2 : index
    %c2_46 = arith.constant 2 : index
    %c0_47 = arith.constant 0 : index
    %52 = vector.load %arg6[%c2_45, %c2_46, %c0_47] : memref<18x18x4xf32, #tpu.memory_space<vmem>>, vector<16x16x4xf32>
    %53 = vector.broadcast %51 : vector<1x1x4xf32> to vector<16x16x4xf32>
    %54 = arith.mulf %52, %53 : vector<16x16x4xf32>
    %55 = arith.addf %50, %54 : vector<16x16x4xf32>
    %c0_48 = arith.constant 0 : index
    %c0_49 = arith.constant 0 : index
    %56 = vector.load %arg4[%c0_48, %c0_49] : memref<1x4xf32, #tpu.memory_space<vmem>>, vector<1x4xf32>
    %57 = vector.shape_cast %56 : vector<1x4xf32> to vector<1x1x4xf32>
    %58 = vector.broadcast %57 : vector<1x1x4xf32> to vector<16x16x4xf32>
    %59 = arith.addf %55, %58 : vector<16x16x4xf32>
    %c0_50 = arith.constant 0 : index
    %c0_51 = arith.constant 0 : index
    %c0_52 = arith.constant 0 : index
    %c0_53 = arith.constant 0 : index
    %60 = vector.load %arg5[%c0_50, %c0_51, %c0_52, %c0_53] : memref<1x16x16x4xf32, #tpu.memory_space<vmem>>, vector<1x16x16x4xf32>
    %61 = vector.shape_cast %60 : vector<1x16x16x4xf32> to vector<16x16x4xf32>
    %62 = vector.shape_cast %59 : vector<16x16x4xf32> to vector<1x16x16x4xf32>
    tpu.vector_store %arg5[%c0_50, %c0_51, %c0_52, %c0_53], %62 {strides = array<i32>} : memref<1x16x16x4xf32, #tpu.memory_space<vmem>>, vector<1x16x16x4xf32>,
    return
  }
  func.func @transform_0(%arg0: i32, %arg1: i32) -> (i32, i32, i32, i32) {
    %c0_i32 = arith.constant 0 : i32
    %c0_i32_0 = arith.constant 0 : i32
    %c0_i32_1 = arith.constant 0 : i32
    return %arg0, %c0_i32, %c0_i32_0, %arg1 : i32, i32, i32, i32
  }
  func.func @transform_1(%arg0: i32, %arg1: i32) -> (i32, i32, i32) {
    %c0_i32 = arith.constant 0 : i32
    %c0_i32_0 = arith.constant 0 : i32
    %c0_i32_1 = arith.constant 0 : i32
    return %c0_i32, %c0_i32_0, %arg1 : i32, i32, i32
  }
  func.func @transform_2(%arg0: i32, %arg1: i32) -> (i32, i32) {
    %c0_i32 = arith.constant 0 : i32
    %c0_i32_0 = arith.constant 0 : i32
    return %c0_i32, %arg1 : i32, i32
  }
  func.func @transform_3(%arg0: i32, %arg1: i32) -> (i32, i32, i32, i32) {
    %c0_i32 = arith.constant 0 : i32
    %c0_i32_0 = arith.constant 0 : i32
    %c0_i32_1 = arith.constant 0 : i32
    return %arg0, %c0_i32, %c0_i32_0, %arg1 : i32, i32, i32, i32
  }
}

</mosaic_0001>

<bundles_post_ra>
// kernel: tpu_custom_call.1
= control target key start
LH: loop header
LB: loop body
LE: loop exit
PB: predicated region body
PF: predicated region fallthrough
CT: control target
= control target key end

     0   :  { %s1481_s12 = smov 0   ;;  %s1483_s13 = smov 0   ;;  %s2102_s0 = inlined_call_operand.vmem [shape: f32[2,16,16,4], index: 0, kind: input, shape index: {}]   ;;  %s2103_s1 = inlined_call_operand.vmem [shape: f32[3,3,4], index: 1, kind: input, shape index: {}]   ;;  %s2104_s2 = inlined_call_operand.vmem [shape: f32[1,4], index: 2, kind: input, shape index: {}]   ;;  %s2105_s3 = inlined_call_operand.vmem [shape: f32[2,16,16,4], index: 3, kind: output, shape index: {}]  }
   0x1   :  { %s1485_s14 = smov 0  }
   0x2 LB: > { %s25_s15 = sadd.s32 1, %s1454_s13  ;;  %p1400_p0 = scmp.ge.s32.totalorder %s1458_s14, 1  ;;  %s1458_s14 = sphi %s1485_s14, %s13_s14   ;;  %s1454_s13 = sphi %s1483_s13, %s2107_s13   ;;  %s1450_s12 = sphi %s1481_s12, %s2106_s12  }
   0x3   : > { %p27_p1 = scmp.ge.s32.totalorder %s25_s15, 2  ;;  %p173_p2 = scmp.lt.s32.totalorder %s1458_s14, 3 }
   0x5   : > { %s2109_s15 = smov (%p27_p1, %s25_s15), 0  ;;  %p174_p3 = pnand %p1400_p0, %p173_p2 }
   0x6   : > { %vm233_vm0 = vcmask (!%p174_p3), 31744   ;;  %vm236_vm1 = vcmask (!%p174_p3), 25600   ;;  %vm243_vm2 = vcmask (!%p174_p3), 24576   ;;  %p210_p4 = scmp.lt.s32.totalorder (!%p174_p3), %s1450_s12, 1  ;;  %v1460_v0 = vmov (!%p174_p3), 0.0  }
   0x7   : > { %177 = sbr.rel (%p174_p3) target bundleno = 189 (0xbd), region = 32  ;;  %234 = vst.msk [vmem:[#allocation2] sm:$0xff] (!%p174_p3), %vm233_vm0, %v1460_v0  ;;  %235 = vst.msk [vmem:[#allocation2 + $0x8] sm:$0xff] (!%p174_p3), %vm233_vm0, %v1460_v0  ;;  %v375_v1 = vlaneseq (!%p174_p3)  ;;  %v340_v12 = vld [vmem:[%s2103_s1] sm:$0x7] (!%p174_p3) }
   0x8   : > { %239 = vst.msk [vmem:[#allocation2 + $0x198] sm:$0xff] (!%p174_p3), %vm233_vm0, %v1460_v0  ;;  %240 = vst.msk [vmem:[#allocation2 + $0x1a0] sm:$0xff] (!%p174_p3), %vm233_vm0, %v1460_v0  ;;  %v341_v25 = vld [vmem:[%s2103_s1 + $0x4] sm:$0x7] (!%p174_p3)  ;;  %v342_v36 = vld [vmem:[%s2103_s1 + $0x8] sm:$0x7] (!%p174_p3) }
   0x9   : > { %237 = vst.msk [vmem:[#allocation2 + $0x10] sm:$0x3] (!%p174_p3), %vm236_vm1, %v1460_v0  ;;  %241 = vst.msk [vmem:[#allocation2 + $0x1a8] sm:$0x3] (!%p174_p3), %vm236_vm1, %v1460_v0  ;;  %v376_v2 = vshrl.u32 (!%p174_p3), %v375_v1, 7 }
   0xa   : > { %244 = vst.msk [vmem:[#allocation2 + $0x18] sm:$0x1] (!%p174_p3), %vm243_vm2, %v1460_v0  ;;  %245 = vst.msk [vmem:[#allocation2 + $0x30] sm:$0x1] (!%p174_p3), %vm243_vm2, %v1460_v0 }
   0xb   : > { %246 = vst.msk [vmem:[#allocation2 + $0x48] sm:$0x1] (!%p174_p3), %vm243_vm2, %v1460_v0  ;;  %247 = vst.msk [vmem:[#allocation2 + $0x60] sm:$0x1] (!%p174_p3), %vm243_vm2, %v1460_v0  ;;  %v1575_v16 = vsub.s32 (!%p174_p3), 0, %v376_v2  ;;  %v445_v20 = vsub.s32 (!%p174_p3), 1, %v376_v2 }
   0xc   : > { %248 = vst.msk [vmem:[#allocation2 + $0x78] sm:$0x1] (!%p174_p3), %vm243_vm2, %v1460_v0  ;;  %249 = vst.msk [vmem:[#allocation2 + $0x90] sm:$0x1] (!%p174_p3), %vm243_vm2, %v1460_v0  ;;  %v1583_v21 = vsub.s32 (!%p174_p3), 2, %v376_v2 }
   0xd   : > { %250 = vst.msk [vmem:[#allocation2 + $0xa8] sm:$0x1] (!%p174_p3), %vm243_vm2, %v1460_v0  ;;  %251 = vst.msk [vmem:[#allocation2 + $0xc0] sm:$0x1] (!%p174_p3), %vm243_vm2, %v1460_v0  ;;  %v1607_v32 = vrot.slane (!%p174_p3), %v340_v12, %v1575_v16  ;;  %v1618_v37 = vrot.slane (!%p174_p3), %v340_v12, %v445_v20  ;;  %v1635_v45 = vrot.slane (!%p174_p3), %v341_v25, %v1575_v16 }
   0xe   : > { %252 = vst.msk [vmem:[#allocation2 + $0xd8] sm:$0x1] %vm243_vm2, %v1460_v0  ;;  %253 = vst.msk [vmem:[#allocation2 + $0xf0] sm:$0x1] %vm243_vm2, %v1460_v0  ;;  %s2111_s12 = smov (!%p210_p4, %s1450_s12), 1  ;;  %v1621_v38 = vrot.slane %v340_v12, %v1583_v21  ;;  %v343_v44 = vld [vmem:[#allocation2] sm:$0xff]  ;;  %v1640_v50 = vrot.slane %v341_v25, %v445_v20  ;;  %v1645_v54 = vrot.slane %v341_v25, %v1583_v21 }
   0xf   : > { %254 = vst.msk [vmem:[#allocation2 + $0x108] sm:$0x1] %vm243_vm2, %v1460_v0  ;;  %255 = vst.msk [vmem:[#allocation2 + $0x120] sm:$0x1] %vm243_vm2, %v1460_v0  ;;  %s1408_s16 = sshll.u32 %s2111_s12, 8  ;;  %v379_v46 = vmul.f32 %v1607_v32, %v343_v44  ;;  %v411_v47 = vld [vmem:[#allocation2 + $0x1] sm:$0xff]  ;;  %v1649_v58 = vrot.slane %v342_v36, %v1575_v16  ;;  %v1651_v59 = vrot.slane %v342_v36, %v445_v20 }
  0x10   : > { %256 = vst.msk [vmem:[#allocation2 + $0x138] sm:$0x1] %vm243_vm2, %v1460_v0  ;;  %257 = vst.msk [vmem:[#allocation2 + $0x150] sm:$0x1] %vm243_vm2, %v1460_v0  ;;  %s1549_s19 = scalar_lea.vmem %s2102_s0, %s1408_s16  ;;  %v511_v48 = vld [vmem:[#allocation2 + $0x2] sm:$0xff]  ;;  %v447_v51 = vmul.f32 %v1618_v37, %v411_v47  ;;  %s1715_s30 = scalar_lea.vmem %s2105_s3, %s1408_s16 }
  0x11   : > { %258 = vst.msk [vmem:[#allocation2 + $0x168] sm:$0x1] %vm243_vm2, %v1460_v0  ;;  %259 = vst.msk [vmem:[#allocation2 + $0x180] sm:$0x1] %vm243_vm2, %v1460_v0  ;;  %v276_v3 = vld [vmem:[%s1549_s19] sm:$0xff]  ;;  %v277_v4 = vld [vmem:[%s1549_s19 + $0x8] sm:$0xff]  ;;  %v547_v52 = vmul.f32 %v1621_v38, %v511_v48 }
  0x12   : > { %260 = vst.msk [vmem:[#allocation2 + $0x29] sm:$0x1] %vm243_vm2, %v1460_v0  ;;  %261 = vst.msk [vmem:[#allocation2 + $0x41] sm:$0x1] %vm243_vm2, %v1460_v0  ;;  %v278_v5 = vld [vmem:[%s1549_s19 + $0x10] sm:$0xff]  ;;  %v279_v6 = vld [vmem:[%s1549_s19 + $0x18] sm:$0xff]  ;;  %v479_v62 = vadd.f32 %v447_v51, %v379_v46 }
  0x13   : > { %262 = vst.msk [vmem:[#allocation2 + $0x59] sm:$0x1] %vm243_vm2, %v1460_v0  ;;  %263 = vst.msk [vmem:[#allocation2 + $0x71] sm:$0x1] %vm243_vm2, %v1460_v0  ;;  %v280_v7 = vld [vmem:[%s1549_s19 + $0x20] sm:$0xff]  ;;  %v281_v8 = vld [vmem:[%s1549_s19 + $0x28] sm:$0xff] }
  0x14   : > { %264 = vst.msk [vmem:[#allocation2 + $0x89] sm:$0x1] %vm243_vm2, %v1460_v0  ;;  %265 = vst.msk [vmem:[#allocation2 + $0xa1] sm:$0x1] %vm243_vm2, %v1460_v0  ;;  %v282_v9 = vld [vmem:[%s1549_s19 + $0x30] sm:$0xff]  ;;  %v283_v10 = vld [vmem:[%s1549_s19 + $0x38] sm:$0xff] }
  0x15   : > { %266 = vst.msk [vmem:[#allocation2 + $0xb9] sm:$0x1] %vm243_vm2, %v1460_v0  ;;  %267 = vst.msk [vmem:[#allocation2 + $0xd1] sm:$0x1] %vm243_vm2, %v1460_v0  ;;  %v284_v11 = vld [vmem:[%s1549_s19 + $0x40] sm:$0xff]  ;;  %v285_v13 = vld [vmem:[%s1549_s19 + $0x48] sm:$0xff] }
  0x16   : > { %268 = vst.msk [vmem:[#allocation2 + $0xe9] sm:$0x1] %vm243_vm2, %v1460_v0  ;;  %269 = vst.msk [vmem:[#allocation2 + $0x101] sm:$0x1] %vm243_vm2, %v1460_v0  ;;  %v286_v14 = vld [vmem:[%s1549_s19 + $0x50] sm:$0xff]  ;;  %v287_v15 = vld [vmem:[%s1549_s19 + $0x58] sm:$0xff] }
  0x17   : > { %270 = vst.msk [vmem:[#allocation2 + $0x119] sm:$0x1] %vm243_vm2, %v1460_v0  ;;  %271 = vst.msk [vmem:[#allocation2 + $0x131] sm:$0x1] %vm243_vm2, %v1460_v0  ;;  %v288_v17 = vld [vmem:[%s1549_s19 + $0x60] sm:$0xff]  ;;  %v289_v18 = vld [vmem:[%s1549_s19 + $0x68] sm:$0xff] }
  0x18   : > { %272 = vst.msk [vmem:[#allocation2 + $0x149] sm:$0x1] %vm243_vm2, %v1460_v0  ;;  %273 = vst.msk [vmem:[#allocation2 + $0x161] sm:$0x1] %vm243_vm2, %v1460_v0  ;;  %v290_v19 = vld [vmem:[%s1549_s19 + $0x70] sm:$0xff]  ;;  %v291_v22 = vld [vmem:[%s1549_s19 + $0x78] sm:$0xff] }
  0x19   : > { %274 = vst.msk [vmem:[#allocation2 + $0x179] sm:$0x1] %vm243_vm2, %v1460_v0  ;;  %275 = vst.msk [vmem:[#allocation2 + $0x191] sm:$0x1] %vm243_vm2, %v1460_v0  ;;  %v292_v23 = vld [vmem:[%s1549_s19 + $0x80] sm:$0xff]  ;;  %v293_v24 = vld [vmem:[%s1549_s19 + $0x88] sm:$0xff]  ;;  %v1656_v0 = vrot.slane %v342_v36, %v1583_v21 }
  0x1a   : > { %308 = vst.msk [vmem:[#allocation2 + $0x19] sm:$0xff] %vm233_vm0, %v276_v3  ;;  %309 = vst.msk [vmem:[#allocation2 + $0x21] sm:$0xff] %vm233_vm0, %v277_v4  ;;  %v294_v26 = vld [vmem:[%s1549_s19 + $0x90] sm:$0xff]  ;;  %v295_v27 = vld [vmem:[%s1549_s19 + $0x98] sm:$0xff] }
  0x1b   : > { %310 = vst.msk [vmem:[#allocation2 + $0x31] sm:$0xff] %vm233_vm0, %v278_v5  ;;  %311 = vst.msk [vmem:[#allocation2 + $0x39] sm:$0xff] %vm233_vm0, %v279_v6  ;;  %v296_v28 = vld [vmem:[%s1549_s19 + $0xa0] sm:$0xff]  ;;  %v297_v29 = vld [vmem:[%s1549_s19 + $0xa8] sm:$0xff] }
  0x1c   : > { %312 = vst.msk [vmem:[#allocation2 + $0x49] sm:$0xff] %vm233_vm0, %v280_v7  ;;  %313 = vst.msk [vmem:[#allocation2 + $0x51] sm:$0xff] %vm233_vm0, %v281_v8  ;;  %v298_v30 = vld [vmem:[%s1549_s19 + $0xb0] sm:$0xff]  ;;  %v299_v31 = vld [vmem:[%s1549_s19 + $0xb8] sm:$0xff] }
  0x1d   : > { %314 = vst.msk [vmem:[#allocation2 + $0x61] sm:$0xff] %vm233_vm0, %v282_v9  ;;  %315 = vst.msk [vmem:[#allocation2 + $0x69] sm:$0xff] %vm233_vm0, %v283_v10  ;;  %v300_v33 = vld [vmem:[%s1549_s19 + $0xc0] sm:$0xff]  ;;  %v301_v34 = vld [vmem:[%s1549_s19 + $0xc8] sm:$0xff] }
  0x1e   : > { %316 = vst.msk [vmem:[#allocation2 + $0x79] sm:$0xff] %vm233_vm0, %v284_v11  ;;  %317 = vst.msk [vmem:[#allocation2 + $0x81] sm:$0xff] %vm233_vm0, %v285_v13  ;;  %v302_v35 = vld [vmem:[%s1549_s19 + $0xd0] sm:$0xff]  ;;  %v303_v39 = vld [vmem:[%s1549_s19 + $0xd8] sm:$0xff]  ;;  %v579_v11 = vadd.f32 %v547_v52, %v479_v62 }
  0x1f   : > { %318 = vst.msk [vmem:[#allocation2 + $0x91] sm:$0xff] %vm233_vm0, %v286_v14  ;;  %319 = vst.msk [vmem:[#allocation2 + $0x99] sm:$0xff] %vm233_vm0, %v287_v15  ;;  %v304_v40 = vld [vmem:[%s1549_s19 + $0xe0] sm:$0xff]  ;;  %v305_v41 = vld [vmem:[%s1549_s19 + $0xe8] sm:$0xff] }
  0x20   : > { %320 = vst.msk [vmem:[#allocation2 + $0xa9] sm:$0xff] %vm233_vm0, %v288_v17  ;;  %321 = vst.msk [vmem:[#allocation2 + $0xb1] sm:$0xff] %vm233_vm0, %v289_v18  ;;  %v306_v42 = vld [vmem:[%s1549_s19 + $0xf0] sm:$0xff]  ;;  %v307_v43 = vld [vmem:[%s1549_s19 + $0xf8] sm:$0xff] }
  0x21   : > { %322 = vst.msk [vmem:[#allocation2 + $0xc1] sm:$0xff] %vm233_vm0, %v290_v19  ;;  %323 = vst.msk [vmem:[#allocation2 + $0xc9] sm:$0xff] %vm233_vm0, %v291_v22  ;;  %v611_v49 = vld [vmem:[#allocation2 + $0x18] sm:$0xff]  ;;  %v344_v60 = vld [vmem:[#allocation2 + $0x8] sm:$0xff] }
  0x22   : > { %324 = vst.msk [vmem:[#allocation2 + $0xd9] sm:$0xff] %vm233_vm0, %v292_v23  ;;  %325 = vst.msk [vmem:[#allocation2 + $0xe1] sm:$0xff] %vm233_vm0, %v293_v24  ;;  %v711_v53 = vld [vmem:[#allocation2 + $0x19] sm:$0xff]  ;;  %v381_v55 = vmul.f32 %v611_v49, %v1607_v32  ;;  %v912_v57 = vld [vmem:[#allocation2 + $0x30] sm:$0xff]  ;;  %v647_v63 = vmul.f32 %v1635_v45, %v611_v49  ;;  %v380_v1 = vmul.f32 %v1607_v32, %v344_v60 }
  0x23   : > { %326 = vst.msk [vmem:[#allocation2 + $0xf1] sm:$0xff] %vm233_vm0, %v294_v26  ;;  %327 = vst.msk [vmem:[#allocation2 + $0xf9] sm:$0xff] %vm233_vm0, %v295_v27  ;;  %v811_v56 = vld [vmem:[#allocation2 + $0x1a] sm:$0xff]  ;;  %v449_v61 = vmul.f32 %v711_v53, %v1618_v37  ;;  %v412_v2 = vld [vmem:[#allocation2 + $0x9] sm:$0xff]  ;;  %v747_v12 = vmul.f32 %v1640_v50, %v711_v53  ;;  %v948_v15 = vmul.f32 %v1649_v58, %v912_v57 }
  0x24   : > { %328 = vst.msk [vmem:[#allocation2 + $0x109] sm:$0xff] %vm233_vm0, %v296_v28  ;;  %329 = vst.msk [vmem:[#allocation2 + $0x111] sm:$0xff] %vm233_vm0, %v297_v29  ;;  %v512_v3 = vld [vmem:[#allocation2 + $0xa] sm:$0xff]  ;;  %v612_v4 = vld [vmem:[#allocation2 + $0x20] sm:$0xff]  ;;  %v448_v7 = vmul.f32 %v1618_v37, %v412_v2  ;;  %v847_v13 = vmul.f32 %v1645_v54, %v811_v56  ;;  %v549_v19 = vmul.f32 %v811_v56, %v1621_v38 }
  0x25   : > { %330 = vst.msk [vmem:[#allocation2 + $0x121] sm:$0xff] %vm233_vm0, %v298_v30  ;;  %331 = vst.msk [vmem:[#allocation2 + $0x129] sm:$0xff] %vm233_vm0, %v299_v31  ;;  %v1012_v5 = vld [vmem:[#allocation2 + $0x31] sm:$0xff]  ;;  %v548_v8 = vmul.f32 %v1621_v38, %v512_v3  ;;  %v712_v9 = vld [vmem:[#allocation2 + $0x21] sm:$0xff]  ;;  %v481_v10 = vadd.f32 %v449_v61, %v381_v55  ;;  %v648_v17 = vmul.f32 %v1635_v45, %v612_v4 }
  0x26   : > { %332 = vst.msk [vmem:[#allocation2 + $0x139] sm:$0xff] %vm233_vm0, %v300_v33  ;;  %333 = vst.msk [vmem:[#allocation2 + $0x141] sm:$0xff] %vm233_vm0, %v301_v34  ;;  %v1112_v6 = vld [vmem:[#allocation2 + $0x32] sm:$0xff]  ;;  %v812_v14 = vld [vmem:[#allocation2 + $0x22] sm:$0xff]  ;;  %v480_v16 = vadd.f32 %v448_v7, %v380_v1  ;;  %v679_v20 = vadd.f32 %v647_v63, %v579_v11  ;;  %v1048_v21 = vmul.f32 %v1651_v59, %v1012_v5 }
  0x27   : > { %334 = vst.msk [vmem:[#allocation2 + $0x151] sm:$0xff] %vm233_vm0, %v302_v35  ;;  %335 = vst.msk [vmem:[#allocation2 + $0x159] sm:$0xff] %vm233_vm0, %v303_v39  ;;  %v913_v18 = vld [vmem:[#allocation2 + $0x38] sm:$0xff]  ;;  %v1148_v22 = vmul.f32 %v1656_v0, %v1112_v6  ;;  %v748_v23 = vmul.f32 %v1640_v50, %v712_v9  ;;  %v848_v26 = vmul.f32 %v1645_v54, %v812_v14  ;;  %v1674_v33 = vld [vmem:[#allocation2 + $0x48] sm:$0xff] }
  0x28   : > { %336 = vst.msk [vmem:[#allocation2 + $0x169] sm:$0xff] %vm233_vm0, %v304_v40  ;;  %337 = vst.msk [vmem:[#allocation2 + $0x171] sm:$0xff] %vm233_vm0, %v305_v41  ;;  %v1013_v24 = vld [vmem:[#allocation2 + $0x39] sm:$0xff]  ;;  %v580_v25 = vadd.f32 %v548_v8, %v480_v16  ;;  %v581_v28 = vadd.f32 %v549_v19, %v481_v10  ;;  %v649_v29 = vmul.f32 %v912_v57, %v1635_v45  ;;  %v1682_v44 = vld [vmem:[#allocation2 + $0x49] sm:$0xff] }
  0x29   : > { %338 = vst.msk [vmem:[#allocation2 + $0x181] sm:$0xff] %vm233_vm0, %v306_v42  ;;  %339 = vst.msk [vmem:[#allocation2 + $0x189] sm:$0xff] %vm233_vm0, %v307_v43  ;;  %v1670_v27 = vld [vmem:[#allocation2 + $0x3a] sm:$0xff]  ;;  %v779_v30 = vadd.f32 %v747_v12, %v679_v20  ;;  %v949_v31 = vmul.f32 %v1649_v58, %v913_v18  ;;  %v382_v34 = vmul.f32 %v612_v4, %v1607_v32  ;;  %v1688_v53 = vld [vmem:[#allocation2 + $0x4a] sm:$0xff] }
  0x2a   : > { %v450_v35 = vmul.f32 %v712_v9, %v1618_v37  ;;  %v680_v36 = vadd.f32 %v648_v17, %v580_v25  ;;  %v1049_v39 = vmul.f32 %v1651_v59, %v1013_v24  ;;  %v681_v40 = vadd.f32 %v649_v29, %v581_v28  ;;  %v1694_v2 = vld [vmem:[#allocation2 + $0x50] sm:$0xff] }
  0x2b   : > { %v749_v41 = vmul.f32 %v1012_v5, %v1640_v50  ;;  %v879_v42 = vadd.f32 %v847_v13, %v779_v30  ;;  %v1149_v43 = vmul.f32 %v1656_v0, %v1670_v27  ;;  %v550_v47 = vmul.f32 %v812_v14, %v1621_v38  ;;  %v1015_v20 = vld [vmem:[#allocation2 + $0x51] sm:$0xff] }
  0x2c   : > { %v482_v46 = vadd.f32 %v450_v35, %v382_v34  ;;  %v780_v48 = vadd.f32 %v748_v23, %v680_v36  ;;  %v849_v51 = vmul.f32 %v1112_v6, %v1645_v54  ;;  %v950_v52 = vmul.f32 %v1649_v58, %v1674_v33  ;;  %v1115_v30 = vld [vmem:[#allocation2 + $0x52] sm:$0xff] }
  0x2d   : > { %v781_v49 = vadd.f32 %v749_v41, %v681_v40  ;;  %v980_v55 = vadd.f32 %v948_v15, %v879_v42  ;;  %v650_v60 = vmul.f32 %v913_v18, %v1635_v45  ;;  %v383_v61 = vmul.f32 %v912_v57, %v1607_v32  ;;  %v1703_v57 = vld [vmem:[%s2104_s2] ss:$0 sm:$0xff] }
  0x2e   : > { %v582_v56 = vadd.f32 %v550_v47, %v482_v46  ;;  %v880_v62 = vadd.f32 %v848_v26, %v780_v48  ;;  %v1050_v1 = vmul.f32 %v1651_v59, %v1682_v44  ;;  %v451_v3 = vmul.f32 %v1012_v5, %v1618_v37  ;;  %v1016_v48 = vld [vmem:[#allocation2 + $0x61] sm:$0xff] }
  0x2f   : > { %v881_v63 = vadd.f32 %v849_v51, %v781_v49  ;;  %v1080_v4 = vadd.f32 %v1048_v21, %v980_v55  ;;  %v1150_v7 = vmul.f32 %v1656_v0, %v1688_v53  ;;  %v750_v9 = vmul.f32 %v1013_v24, %v1640_v50  ;;  %v1116_v55 = vld [vmem:[#allocation2 + $0x62] sm:$0xff] }
  0x30   : > { %v682_v8 = vadd.f32 %v650_v60, %v582_v56  ;;  %v981_v10 = vadd.f32 %v949_v31, %v880_v62  ;;  %v483_v12 = vadd.f32 %v451_v3, %v383_v61  ;;  %v551_v13 = vmul.f32 %v1112_v6, %v1621_v38 }
  0x31   : > { %v982_v11 = vadd.f32 %v950_v52, %v881_v63  ;;  %v1180_v14 = vadd.f32 %v1148_v22, %v1080_v4  ;;  %v850_v5 = vmul.f32 %v1670_v27, %v1645_v54  ;;  %v951_v16 = vmul.f32 %v1649_v58, %v1694_v2  ;;  %v917_v4 = vld [vmem:[#allocation2 + $0x68] sm:$0xff] }
  0x32   : > { %v782_v15 = vadd.f32 %v750_v9, %v682_v8  ;;  %v1081_v17 = vadd.f32 %v1049_v39, %v981_v10  ;;  %v583_v21 = vadd.f32 %v551_v13, %v483_v12  ;;  %v651_v6 = vmul.f32 %v1674_v33, %v1635_v45  ;;  %v916_v39 = vld [vmem:[#allocation2 + $0x60] sm:$0xff]  ;;  %v1117_v12 = vld [vmem:[#allocation2 + $0x6a] sm:$0xff] }
  0x33   : > { %v1082_v19 = vadd.f32 %v1050_v1, %v982_v11  ;;  %v1219_v22 = vadd.f32 %v1703_v57, %v1180_v14  ;;  %v384_v25 = vmul.f32 %v913_v18, %v1607_v32  ;;  %v452_v26 = vmul.f32 %v1013_v24, %v1618_v37 }
  0x34   : > { %v882_v23 = vadd.f32 %v850_v5, %v782_v15  ;;  %v1181_v28 = vadd.f32 %v1149_v43, %v1081_v17  ;;  %v683_v31 = vadd.f32 %v651_v6, %v583_v21  ;;  %v751_v34 = vmul.f32 %v1682_v44, %v1640_v50 }
  0x35   : > { %v1182_v29 = vadd.f32 %v1150_v7, %v1082_v19  ;;  %1251 = vst.msk [vmem:[%s1715_s30] sm:$0xff] %vm233_vm0, %v1219_v22  ;;  %v1051_v36 = vmul.f32 %v1651_v59, %v1015_v20  ;;  %v484_v40 = vadd.f32 %v452_v26, %v384_v25  ;;  %v552_v18 = vmul.f32 %v1670_v27, %v1621_v38  ;;  %v1017_v7 = vld [vmem:[#allocation2 + $0x69] sm:$0xff]  ;;  %v918_v19 = vld [vmem:[#allocation2 + $0x78] sm:$0xff] }
  0x36   : > { %v983_v35 = vadd.f32 %v951_v16, %v882_v23  ;;  %v1220_v24 = vadd.f32 %v1703_v57, %v1181_v28  ;;  %v783_v42 = vadd.f32 %v751_v34, %v683_v31  ;;  %v851_v43 = vmul.f32 %v1688_v53, %v1645_v54  ;;  %v1018_v28 = vld [vmem:[#allocation2 + $0x79] sm:$0xff] }
  0x37   : > { %v1221_v41 = vadd.f32 %v1703_v57, %v1182_v29  ;;  %v1151_v47 = vmul.f32 %v1656_v0, %v1115_v30  ;;  %v584_v49 = vadd.f32 %v552_v18, %v484_v40  ;;  %v652_v51 = vmul.f32 %v1694_v2, %v1635_v45  ;;  %v1763_v29 = vld [vmem:[#allocation2 + $0x7a] sm:$0xff] }
  0x38   : > { %v1083_v46 = vadd.f32 %v1051_v36, %v983_v35  ;;  %1252 = vst.msk [vmem:[%s1715_s30 + $0x8] sm:$0xff] %vm233_vm0, %v1220_v24  ;;  %v883_v27 = vadd.f32 %v851_v43, %v783_v42  ;;  %v952_v52 = vmul.f32 %v1649_v58, %v916_v39  ;;  %v385_v56 = vmul.f32 %v1674_v33, %v1607_v32 }
  0x39   : > { %1253 = vst.msk [vmem:[%s1715_s30 + $0x10] sm:$0xff] %vm233_vm0, %v1221_v41  ;;  %v453_v60 = vmul.f32 %v1682_v44, %v1618_v37  ;;  %v684_v62 = vadd.f32 %v652_v51, %v584_v49  ;;  %v752_v63 = vmul.f32 %v1015_v20, %v1640_v50  ;;  %v1052_v3 = vmul.f32 %v1651_v59, %v1016_v48 }
  0x3a   : > { %v1183_v61 = vadd.f32 %v1151_v47, %v1083_v46  ;;  %v984_v1 = vadd.f32 %v952_v52, %v883_v27  ;;  %v553_v9 = vmul.f32 %v1688_v53, %v1621_v38  ;;  %v1152_v33 = vmul.f32 %v1656_v0, %v1116_v55  ;;  %v919_v27 = vld [vmem:[#allocation2 + $0x80] sm:$0xff] }
  0x3b   : > { %v485_v8 = vadd.f32 %v453_v60, %v385_v56  ;;  %v784_v11 = vadd.f32 %v752_v63, %v684_v62  ;;  %v852_v44 = vmul.f32 %v1115_v30, %v1645_v54  ;;  %v653_v15 = vmul.f32 %v916_v39, %v1635_v45 }
  0x3c   : > { %v1222_v10 = vadd.f32 %v1703_v57, %v1183_v61  ;;  %v1084_v13 = vadd.f32 %v1052_v3, %v984_v1  ;;  %v386_v5 = vmul.f32 %v1694_v2, %v1607_v32  ;;  %v953_v53 = vmul.f32 %v1649_v58, %v917_v4  ;;  %v1119_v3 = vld [vmem:[#allocation2 + $0x82] sm:$0xff] }
  0x3d   : > { %v585_v14 = vadd.f32 %v553_v9, %v485_v8  ;;  %v884_v16 = vadd.f32 %v852_v44, %v784_v11  ;;  %v1053_v17 = vmul.f32 %v1651_v59, %v1017_v7  ;;  %v454_v21 = vmul.f32 %v1015_v20, %v1618_v37 }
  0x3e   : > { %1254 = vst.msk [vmem:[%s1715_s30 + $0x18] sm:$0xff] %vm233_vm0, %v1222_v10  ;;  %v1184_v6 = vadd.f32 %v1152_v33, %v1084_v13  ;;  %v1153_v22 = vmul.f32 %v1656_v0, %v1117_v12  ;;  %v753_v25 = vmul.f32 %v1016_v48, %v1640_v50  ;;  %v853_v2 = vmul.f32 %v1116_v55, %v1645_v54 }
  0x3f   : > { %v685_v23 = vadd.f32 %v653_v15, %v585_v14  ;;  %v985_v26 = vadd.f32 %v953_v53, %v884_v16  ;;  %v486_v31 = vadd.f32 %v454_v21, %v386_v5  ;;  %v554_v34 = vmul.f32 %v1115_v30, %v1621_v38  ;;  %v920_v14 = vld [vmem:[#allocation2 + $0x90] sm:$0xff] }
  0x40   : > { %v1223_v35 = vadd.f32 %v1703_v57, %v1184_v6  ;;  %v954_v20 = vmul.f32 %v1649_v58, %v918_v19  ;;  %v387_v40 = vmul.f32 %v916_v39, %v1607_v32  ;;  %v654_v41 = vmul.f32 %v917_v4, %v1635_v45  ;;  %v1019_v39 = vld [vmem:[#allocation2 + $0x81] sm:$0xff] }
  0x41   : > { %v785_v36 = vadd.f32 %v753_v25, %v685_v23  ;;  %v1085_v18 = vadd.f32 %v1053_v17, %v985_v26  ;;  %v586_v24 = vadd.f32 %v554_v34, %v486_v31  ;;  %v455_v42 = vmul.f32 %v1016_v48, %v1618_v37  ;;  %v1797_v31 = vld [vmem:[#allocation2 + $0x98] sm:$0xff] }
  0x42   : > { %1255 = vst.msk [vmem:[%s1715_s30 + $0x20] sm:$0xff] %vm233_vm0, %v1223_v35  ;;  %v1054_v46 = vmul.f32 %v1651_v59, %v1018_v28  ;;  %v1154_v30 = vmul.f32 %v1656_v0, %v1763_v29  ;;  %v754_v47 = vmul.f32 %v1017_v7, %v1640_v50  ;;  %v555_v56 = vmul.f32 %v1116_v55, %v1621_v38 }
  0x43   : > { %v885_v43 = vadd.f32 %v853_v2, %v785_v36  ;;  %v1185_v49 = vadd.f32 %v1153_v22, %v1085_v18  ;;  %v686_v51 = vadd.f32 %v654_v41, %v586_v24  ;;  %v487_v52 = vadd.f32 %v455_v42, %v387_v40  ;;  %v1120_v22 = vld [vmem:[#allocation2 + $0x92] sm:$0xff] }
  0x44   : > { %v854_v48 = vmul.f32 %v1117_v12, %v1645_v54  ;;  %v655_v61 = vmul.f32 %v918_v19, %v1635_v45  ;;  %v388_v62 = vmul.f32 %v917_v4, %v1607_v32  ;;  %v456_v9 = vmul.f32 %v1017_v7, %v1618_v37  ;;  %v1020_v4 = vld [vmem:[#allocation2 + $0x91] sm:$0xff]  ;;  %v1021_v24 = vld [vmem:[#allocation2 + $0x99] sm:$0xff] }
  0x45   : > { %v986_v60 = vadd.f32 %v954_v20, %v885_v43  ;;  %v1224_v63 = vadd.f32 %v1703_v57, %v1185_v49  ;;  %v786_v1 = vadd.f32 %v754_v47, %v686_v51  ;;  %v587_v8 = vadd.f32 %v555_v56, %v487_v52  ;;  %v1121_v47 = vld [vmem:[#allocation2 + $0x9a] sm:$0xff] }
  0x46   : > { %v955_v33 = vmul.f32 %v1649_v58, %v919_v27  ;;  %v1055_v11 = vmul.f32 %v1651_v59, %v1019_v39  ;;  %v755_v55 = vmul.f32 %v1018_v28, %v1640_v50  ;;  %v488_v15 = vadd.f32 %v456_v9, %v388_v62 }
  0x47   : > { %v1086_v10 = vadd.f32 %v1054_v46, %v986_v60  ;;  %1256 = vst.msk [vmem:[%s1715_s30 + $0x28] sm:$0xff] %vm233_vm0, %v1224_v63  ;;  %v886_v44 = vadd.f32 %v854_v48, %v786_v1  ;;  %v687_v13 = vadd.f32 %v655_v61, %v587_v8  ;;  %v556_v5 = vmul.f32 %v1117_v12, %v1621_v38  ;;  %v922_v1 = vld [vmem:[#allocation2 + $0xa8] sm:$0xff] }
  0x48   : > { %v1155_v53 = vmul.f32 %v1656_v0, %v1119_v3  ;;  %v855_v7 = vmul.f32 %v1763_v29, %v1645_v54  ;;  %v656_v17 = vmul.f32 %v919_v27, %v1635_v45  ;;  %v389_v25 = vmul.f32 %v918_v19, %v1607_v32 }
  0x49   : > { %v1186_v16 = vadd.f32 %v1154_v30, %v1086_v10  ;;  %v987_v21 = vadd.f32 %v955_v33, %v886_v44  ;;  %v787_v6 = vadd.f32 %v755_v55, %v687_v13  ;;  %v588_v23 = vadd.f32 %v556_v5, %v488_v15  ;;  %v1122_v44 = vld [vmem:[#allocation2 + $0xaa] sm:$0xff] }
  0x4a   : > { %v956_v2 = vmul.f32 %v1649_v58, %v920_v14  ;;  %v1056_v12 = vmul.f32 %v1651_v59, %v1020_v4  ;;  %v457_v34 = vmul.f32 %v1018_v28, %v1618_v37  ;;  %v756_v40 = vmul.f32 %v1019_v39, %v1640_v50 }
  0x4b   : > { %v1225_v26 = vadd.f32 %v1703_v57, %v1186_v16  ;;  %v1087_v35 = vadd.f32 %v1055_v11, %v987_v21  ;;  %v887_v36 = vadd.f32 %v855_v7, %v787_v6  ;;  %v688_v20 = vadd.f32 %v656_v17, %v588_v23  ;;  %v1022_v11 = vld [vmem:[#allocation2 + $0xa9] sm:$0xff] }
  0x4c   : > { %v1156_v18 = vmul.f32 %v1656_v0, %v1120_v22  ;;  %v856_v19 = vmul.f32 %v1119_v3, %v1645_v54  ;;  %v489_v41 = vadd.f32 %v457_v34, %v389_v25  ;;  %v557_v42 = vmul.f32 %v1763_v29, %v1621_v38 }
  0x4d   : > { %1257 = vst.msk [vmem:[%s1715_s30 + $0x30] sm:$0xff] %vm233_vm0, %v1225_v26  ;;  %v1187_v43 = vadd.f32 %v1155_v53, %v1087_v35  ;;  %v988_v46 = vadd.f32 %v956_v2, %v887_v36  ;;  %v788_v30 = vadd.f32 %v756_v40, %v688_v20  ;;  %v957_v28 = vmul.f32 %v1649_v58, %v1797_v31  ;;  %v923_v2 = vld [vmem:[#allocation2 + $0xb0] sm:$0xff] }
  0x4e   : > { %v589_v49 = vadd.f32 %v557_v42, %v489_v41  ;;  %v657_v51 = vmul.f32 %v920_v14, %v1635_v45  ;;  %v390_v52 = vmul.f32 %v919_v27, %v1607_v32  ;;  %v458_v56 = vmul.f32 %v1019_v39, %v1618_v37 }
  0x4f   : > { %v1226_v60 = vadd.f32 %v1703_v57, %v1187_v43  ;;  %v1088_v48 = vadd.f32 %v1056_v12, %v988_v46  ;;  %v888_v61 = vadd.f32 %v856_v19, %v788_v30  ;;  %v1057_v29 = vmul.f32 %v1651_v59, %v1021_v24 }
  0x50   : > { %v689_v62 = vadd.f32 %v657_v51, %v589_v49  ;;  %v757_v63 = vmul.f32 %v1020_v4, %v1640_v50  ;;  %v490_v8 = vadd.f32 %v458_v56, %v390_v52  ;;  %v558_v9 = vmul.f32 %v1119_v3, %v1621_v38  ;;  %v924_v51 = vld [vmem:[#allocation2 + $0xc0] sm:$0xff] }
  0x51   : > { %1258 = vst.msk [vmem:[%s1715_s30 + $0x38] sm:$0xff] %vm233_vm0, %v1226_v60  ;;  %v1188_v10 = vadd.f32 %v1156_v18, %v1088_v48  ;;  %v989_v33 = vadd.f32 %v957_v28, %v888_v61  ;;  %v1157_v27 = vmul.f32 %v1656_v0, %v1121_v47  ;;  %v857_v39 = vmul.f32 %v1120_v22, %v1645_v54  ;;  %v1123_v18 = vld [vmem:[#allocation2 + $0xb2] sm:$0xff]  ;;  %v1024_v61 = vld [vmem:[#allocation2 + $0xc1] sm:$0xff] }
  0x52   : > { %v789_v55 = vadd.f32 %v757_v63, %v689_v62  ;;  %v590_v13 = vadd.f32 %v558_v9, %v490_v8  ;;  %v658_v15 = vmul.f32 %v1797_v31, %v1635_v45  ;;  %v391_v5 = vmul.f32 %v920_v14, %v1607_v32  ;;  %v1023_v14 = vld [vmem:[#allocation2 + $0xb1] sm:$0xff]  ;;  %v1124_v62 = vld [vmem:[#allocation2 + $0xc2] sm:$0xff] }
  0x53   : > { %v1227_v3 = vadd.f32 %v1703_v57, %v1188_v10  ;;  %v1089_v16 = vadd.f32 %v1057_v29, %v989_v33  ;;  %v958_v53 = vmul.f32 %v1649_v58, %v922_v1  ;;  %v459_v7 = vmul.f32 %v1020_v4, %v1618_v37 }
  0x54   : > { %v889_v17 = vadd.f32 %v857_v39, %v789_v55  ;;  %v1058_v21 = vmul.f32 %v1651_v59, %v1022_v11  ;;  %v690_v6 = vadd.f32 %v658_v15, %v590_v13  ;;  %v758_v23 = vmul.f32 %v1021_v24, %v1640_v50 }
  0x55   : > { %1259 = vst.msk [vmem:[%s1715_s30 + $0x40] sm:$0xff] %vm233_vm0, %v1227_v3  ;;  %v1189_v25 = vadd.f32 %v1157_v27, %v1089_v16  ;;  %v1158_v26 = vmul.f32 %v1656_v0, %v1122_v44  ;;  %v491_v12 = vadd.f32 %v459_v7, %v391_v5  ;;  %v559_v34 = vmul.f32 %v1120_v22, %v1621_v38  ;;  %v925_v16 = vld [vmem:[#allocation2 + $0xc8] sm:$0xff] }
  0x56   : > { %v990_v35 = vadd.f32 %v958_v53, %v889_v17  ;;  %v790_v36 = vadd.f32 %v758_v23, %v690_v6  ;;  %v858_v4 = vmul.f32 %v1121_v47, %v1645_v54  ;;  %v659_v20 = vmul.f32 %v922_v1, %v1635_v45 }
  0x57   : > { %v1228_v40 = vadd.f32 %v1703_v57, %v1189_v25  ;;  %v591_v19 = vadd.f32 %v559_v34, %v491_v12  ;;  %v392_v41 = vmul.f32 %v1797_v31, %v1607_v32  ;;  %v460_v42 = vmul.f32 %v1021_v24, %v1618_v37  ;;  %v1125_v25 = vld [vmem:[#allocation2 + $0xca] sm:$0xff] }
  0x58   : > { %v1090_v43 = vadd.f32 %v1058_v21, %v990_v35  ;;  %v890_v46 = vadd.f32 %v858_v4, %v790_v36  ;;  %v959_v30 = vmul.f32 %v1649_v58, %v923_v2  ;;  %v1059_v22 = vmul.f32 %v1651_v59, %v1023_v14 }
  0x59   : > { %1260 = vst.msk [vmem:[%s1715_s30 + $0x48] sm:$0xff] %vm233_vm0, %v1228_v40  ;;  %v691_v28 = vadd.f32 %v659_v20, %v591_v19  ;;  %v759_v49 = vmul.f32 %v1022_v11, %v1640_v50  ;;  %v492_v52 = vadd.f32 %v460_v42, %v392_v41  ;;  %v560_v56 = vmul.f32 %v1121_v47, %v1621_v38  ;;  %v926_v19 = vld [vmem:[#allocation2 + $0xd8] sm:$0xff] }
  0x5a   : > { %v1190_v60 = vadd.f32 %v1158_v26, %v1090_v43  ;;  %v991_v48 = vadd.f32 %v959_v30, %v890_v46  ;;  %v1159_v31 = vmul.f32 %v1656_v0, %v1123_v18  ;;  %v859_v24 = vmul.f32 %v1122_v44, %v1645_v54  ;;  %v1026_v30 = vld [vmem:[#allocation2 + $0xd9] sm:$0xff] }
  0x5b   : > { %v791_v29 = vadd.f32 %v759_v49, %v691_v28  ;;  %v592_v63 = vadd.f32 %v560_v56, %v492_v52  ;;  %v660_v8 = vmul.f32 %v923_v2, %v1635_v45  ;;  %v393_v9 = vmul.f32 %v922_v1, %v1607_v32  ;;  %v1025_v1 = vld [vmem:[#allocation2 + $0xc9] sm:$0xff]  ;;  %v1126_v28 = vld [vmem:[#allocation2 + $0xda] sm:$0xff] }
  0x5c   : > { %v1229_v10 = vadd.f32 %v1703_v57, %v1190_v60  ;;  %v1091_v33 = vadd.f32 %v1059_v22, %v991_v48  ;;  %v960_v47 = vmul.f32 %v1649_v58, %v924_v51  ;;  %v461_v27 = vmul.f32 %v1022_v11, %v1618_v37 }
  0x5d   : > { %v891_v39 = vadd.f32 %v859_v24, %v791_v29  ;;  %v1060_v55 = vmul.f32 %v1651_v59, %v1024_v61  ;;  %v692_v13 = vadd.f32 %v660_v8, %v592_v63  ;;  %v760_v15 = vmul.f32 %v1023_v14, %v1640_v50 }
  0x5e   : > { %1261 = vst.msk [vmem:[%s1715_s30 + $0x50] sm:$0xff] %vm233_vm0, %v1229_v10  ;;  %v1191_v5 = vadd.f32 %v1159_v31, %v1091_v33  ;;  %v1160_v3 = vmul.f32 %v1656_v0, %v1124_v62  ;;  %v493_v53 = vadd.f32 %v461_v27, %v393_v9  ;;  %v561_v7 = vmul.f32 %v1122_v44, %v1621_v38  ;;  %v927_v33 = vld [vmem:[#allocation2 + $0xe0] sm:$0xff] }
  0x5f   : > { %v992_v17 = vadd.f32 %v960_v47, %v891_v39  ;;  %v792_v21 = vadd.f32 %v760_v15, %v692_v13  ;;  %v860_v11 = vmul.f32 %v1123_v18, %v1645_v54  ;;  %v661_v6 = vmul.f32 %v924_v51, %v1635_v45 }
  0x60   : > { %v1230_v23 = vadd.f32 %v1703_v57, %v1191_v5  ;;  %v593_v26 = vadd.f32 %v561_v7, %v493_v53  ;;  %v394_v12 = vmul.f32 %v923_v2, %v1607_v32  ;;  %v462_v34 = vmul.f32 %v1023_v14, %v1618_v37  ;;  %v1127_v5 = vld [vmem:[#allocation2 + $0xe2] sm:$0xff] }
  0x61   : > { %v1092_v35 = vadd.f32 %v1060_v55, %v992_v17  ;;  %v892_v36 = vadd.f32 %v860_v11, %v792_v21  ;;  %v961_v4 = vmul.f32 %v1649_v58, %v925_v16  ;;  %v1061_v44 = vmul.f32 %v1651_v59, %v1025_v1 }
  0x62   : > { %1262 = vst.msk [vmem:[%s1715_s30 + $0x58] sm:$0xff] %vm233_vm0, %v1230_v23  ;;  %v693_v20 = vadd.f32 %v661_v6, %v593_v26  ;;  %v761_v40 = vmul.f32 %v1024_v61, %v1640_v50  ;;  %v494_v41 = vadd.f32 %v462_v34, %v394_v12  ;;  %v562_v42 = vmul.f32 %v1123_v18, %v1621_v38  ;;  %v928_v26 = vld [vmem:[#allocation2 + $0xf0] sm:$0xff] }
  0x63   : > { %v1192_v43 = vadd.f32 %v1160_v3, %v1092_v35  ;;  %v993_v46 = vadd.f32 %v961_v4, %v892_v36  ;;  %v1161_v2 = vmul.f32 %v1656_v0, %v1125_v25  ;;  %v861_v14 = vmul.f32 %v1124_v62, %v1645_v54  ;;  %v1028_v4 = vld [vmem:[#allocation2 + $0xf1] sm:$0xff] }
  0x64   : > { %v793_v22 = vadd.f32 %v761_v40, %v693_v20  ;;  %v594_v49 = vadd.f32 %v562_v42, %v494_v41  ;;  %v662_v52 = vmul.f32 %v925_v16, %v1635_v45  ;;  %v395_v56 = vmul.f32 %v924_v51, %v1607_v32  ;;  %v1027_v51 = vld [vmem:[#allocation2 + $0xe1] sm:$0xff]  ;;  %v1128_v20 = vld [vmem:[#allocation2 + $0xf2] sm:$0xff] }
  0x65   : > { %v1231_v60 = vadd.f32 %v1703_v57, %v1192_v43  ;;  %v1093_v48 = vadd.f32 %v1061_v44, %v993_v46  ;;  %v962_v18 = vmul.f32 %v1649_v58, %v926_v19  ;;  %v463_v31 = vmul.f32 %v1024_v61, %v1618_v37 }
  0x66   : > { %v893_v24 = vadd.f32 %v861_v14, %v793_v22  ;;  %v1062_v29 = vmul.f32 %v1651_v59, %v1026_v30  ;;  %v694_v63 = vadd.f32 %v662_v52, %v594_v49  ;;  %v762_v8 = vmul.f32 %v1025_v1, %v1640_v50 }
  0x67   : > { %1263 = vst.msk [vmem:[%s1715_s30 + $0x60] sm:$0xff] %vm233_vm0, %v1231_v60  ;;  %v1193_v9 = vadd.f32 %v1161_v2, %v1093_v48  ;;  %v1162_v10 = vmul.f32 %v1656_v0, %v1126_v28  ;;  %v495_v47 = vadd.f32 %v463_v31, %v395_v56  ;;  %v563_v27 = vmul.f32 %v1124_v62, %v1621_v38  ;;  %v929_v48 = vld [vmem:[#allocation2 + $0xf8] sm:$0xff] }
  0x68   : > { %v994_v39 = vadd.f32 %v962_v18, %v893_v24  ;;  %v794_v55 = vadd.f32 %v762_v8, %v694_v63  ;;  %v862_v61 = vmul.f32 %v1125_v25, %v1645_v54  ;;  %v663_v13 = vmul.f32 %v926_v19, %v1635_v45 }
  0x69   : > { %v1232_v15 = vadd.f32 %v1703_v57, %v1193_v9  ;;  %v595_v3 = vadd.f32 %v563_v27, %v495_v47  ;;  %v396_v53 = vmul.f32 %v925_v16, %v1607_v32  ;;  %v464_v7 = vmul.f32 %v1025_v1, %v1618_v37  ;;  %v1129_v9 = vld [vmem:[#allocation2 + $0xfa] sm:$0xff] }
  0x6a   : > { %v1094_v17 = vadd.f32 %v1062_v29, %v994_v39  ;;  %v894_v21 = vadd.f32 %v862_v61, %v794_v55  ;;  %v963_v11 = vmul.f32 %v1649_v58, %v927_v33  ;;  %v1063_v62 = vmul.f32 %v1651_v59, %v1027_v51 }
  0x6b   : > { %1264 = vst.msk [vmem:[%s1715_s30 + $0x68] sm:$0xff] %vm233_vm0, %v1232_v15  ;;  %v695_v6 = vadd.f32 %v663_v13, %v595_v3  ;;  %v763_v23 = vmul.f32 %v1026_v30, %v1640_v50  ;;  %v496_v12 = vadd.f32 %v464_v7, %v396_v53  ;;  %v564_v34 = vmul.f32 %v1125_v25, %v1621_v38  ;;  %v930_v3 = vld [vmem:[#allocation2 + $0x108] sm:$0xff] }
  0x6c   : > { %v1194_v35 = vadd.f32 %v1162_v10, %v1094_v17  ;;  %v995_v36 = vadd.f32 %v963_v11, %v894_v21  ;;  %v1163_v16 = vmul.f32 %v1656_v0, %v1127_v5  ;;  %v863_v1 = vmul.f32 %v1126_v28, %v1645_v54  ;;  %v1030_v11 = vld [vmem:[#allocation2 + $0x109] sm:$0xff] }
  0x6d   : > { %v795_v44 = vadd.f32 %v763_v23, %v695_v6  ;;  %v596_v40 = vadd.f32 %v564_v34, %v496_v12  ;;  %v664_v41 = vmul.f32 %v927_v33, %v1635_v45  ;;  %v397_v42 = vmul.f32 %v926_v19, %v1607_v32  ;;  %v1029_v19 = vld [vmem:[#allocation2 + $0xf9] sm:$0xff]  ;;  %v1130_v6 = vld [vmem:[#allocation2 + $0x10a] sm:$0xff] }
  0x6e   : > { %v1233_v43 = vadd.f32 %v1703_v57, %v1194_v35  ;;  %v1095_v46 = vadd.f32 %v1063_v62, %v995_v36  ;;  %v964_v25 = vmul.f32 %v1649_v58, %v928_v26  ;;  %v465_v2 = vmul.f32 %v1026_v30, %v1618_v37 }
  0x6f   : > { %v895_v14 = vadd.f32 %v863_v1, %v795_v44  ;;  %v1064_v22 = vmul.f32 %v1651_v59, %v1028_v4  ;;  %v696_v49 = vadd.f32 %v664_v41, %v596_v40  ;;  %v764_v52 = vmul.f32 %v1027_v51, %v1640_v50 }
  0x70   : > { %1265 = vst.msk [vmem:[%s1715_s30 + $0x70] sm:$0xff] %vm233_vm0, %v1233_v43  ;;  %v1195_v56 = vadd.f32 %v1163_v16, %v1095_v46  ;;  %v1164_v60 = vmul.f32 %v1656_v0, %v1128_v20  ;;  %v497_v18 = vadd.f32 %v465_v2, %v397_v42  ;;  %v565_v31 = vmul.f32 %v1126_v28, %v1621_v38  ;;  %v931_v46 = vld [vmem:[#allocation2 + $0x110] sm:$0xff] }
  0x71   : > { %v996_v24 = vadd.f32 %v964_v25, %v895_v14  ;;  %v796_v29 = vadd.f32 %v764_v52, %v696_v49  ;;  %v864_v30 = vmul.f32 %v1127_v5, %v1645_v54  ;;  %v665_v63 = vmul.f32 %v928_v26, %v1635_v45 }
  0x72   : > { %v1234_v8 = vadd.f32 %v1703_v57, %v1195_v56  ;;  %v597_v10 = vadd.f32 %v565_v31, %v497_v18  ;;  %v398_v47 = vmul.f32 %v927_v33, %v1607_v32  ;;  %v466_v27 = vmul.f32 %v1027_v51, %v1618_v37  ;;  %v1131_v56 = vld [vmem:[#allocation2 + $0x112] sm:$0xff] }
  0x73   : > { %v1096_v39 = vadd.f32 %v1064_v22, %v996_v24  ;;  %v896_v55 = vadd.f32 %v864_v30, %v796_v29  ;;  %v965_v61 = vmul.f32 %v1649_v58, %v929_v48  ;;  %v1065_v28 = vmul.f32 %v1651_v59, %v1029_v19 }
  0x74   : > { %1266 = vst.msk [vmem:[%s1715_s30 + $0x78] sm:$0xff] %vm233_vm0, %v1234_v8  ;;  %v697_v13 = vadd.f32 %v665_v63, %v597_v10  ;;  %v765_v15 = vmul.f32 %v1028_v4, %v1640_v50  ;;  %v498_v53 = vadd.f32 %v466_v27, %v398_v47  ;;  %v566_v7 = vmul.f32 %v1127_v5, %v1621_v38  ;;  %v932_v10 = vld [vmem:[#allocation2 + $0x120] sm:$0xff] }
  0x75   : > { %v1196_v17 = vadd.f32 %v1164_v60, %v1096_v39  ;;  %v997_v21 = vadd.f32 %v965_v61, %v896_v55  ;;  %v1165_v33 = vmul.f32 %v1656_v0, %v1129_v9  ;;  %v865_v51 = vmul.f32 %v1128_v20, %v1645_v54  ;;  %v1032_v61 = vld [vmem:[#allocation2 + $0x121] sm:$0xff] }
  0x76   : > { %v797_v62 = vadd.f32 %v765_v15, %v697_v13  ;;  %v598_v23 = vadd.f32 %v566_v7, %v498_v53  ;;  %v666_v12 = vmul.f32 %v929_v48, %v1635_v45  ;;  %v399_v34 = vmul.f32 %v928_v26, %v1607_v32  ;;  %v1031_v26 = vld [vmem:[#allocation2 + $0x111] sm:$0xff]  ;;  %v1132_v13 = vld [vmem:[#allocation2 + $0x122] sm:$0xff] }
  0x77   : > { %v1235_v35 = vadd.f32 %v1703_v57, %v1196_v17  ;;  %v1097_v36 = vadd.f32 %v1065_v28, %v997_v21  ;;  %v966_v5 = vmul.f32 %v1649_v58, %v930_v3  ;;  %v467_v16 = vmul.f32 %v1028_v4, %v1618_v37 }
  0x78   : > { %v897_v1 = vadd.f32 %v865_v51, %v797_v62  ;;  %v1066_v44 = vmul.f32 %v1651_v59, %v1030_v11  ;;  %v698_v40 = vadd.f32 %v666_v12, %v598_v23  ;;  %v766_v41 = vmul.f32 %v1029_v19, %v1640_v50 }
  0x79   : > { %1267 = vst.msk [vmem:[%s1715_s30 + $0x80] sm:$0xff] %vm233_vm0, %v1235_v35  ;;  %v1197_v42 = vadd.f32 %v1165_v33, %v1097_v36  ;;  %v1166_v43 = vmul.f32 %v1656_v0, %v1130_v6  ;;  %v499_v25 = vadd.f32 %v467_v16, %v399_v34  ;;  %v567_v2 = vmul.f32 %v1128_v20, %v1621_v38  ;;  %v933_v36 = vld [vmem:[#allocation2 + $0x128] sm:$0xff] }
  0x7a   : > { %v998_v14 = vadd.f32 %v966_v5, %v897_v1  ;;  %v798_v22 = vadd.f32 %v766_v41, %v698_v40  ;;  %v866_v4 = vmul.f32 %v1129_v9, %v1645_v54  ;;  %v667_v49 = vmul.f32 %v930_v3, %v1635_v45 }
  0x7b   : > { %v1236_v52 = vadd.f32 %v1703_v57, %v1197_v42  ;;  %v599_v60 = vadd.f32 %v567_v2, %v499_v25  ;;  %v400_v18 = vmul.f32 %v929_v48, %v1607_v32  ;;  %v468_v31 = vmul.f32 %v1029_v19, %v1618_v37  ;;  %v1133_v42 = vld [vmem:[#allocation2 + $0x12a] sm:$0xff] }
  0x7c   : > { %v1098_v24 = vadd.f32 %v1066_v44, %v998_v14  ;;  %v898_v29 = vadd.f32 %v866_v4, %v798_v22  ;;  %v967_v30 = vmul.f32 %v1649_v58, %v931_v46  ;;  %v1067_v20 = vmul.f32 %v1651_v59, %v1031_v26 }
  0x7d   : > { %1268 = vst.msk [vmem:[%s1715_s30 + $0x88] sm:$0xff] %vm233_vm0, %v1236_v52  ;;  %v699_v63 = vadd.f32 %v667_v49, %v599_v60  ;;  %v767_v8 = vmul.f32 %v1030_v11, %v1640_v50  ;;  %v500_v47 = vadd.f32 %v468_v31, %v400_v18  ;;  %v568_v27 = vmul.f32 %v1129_v9, %v1621_v38  ;;  %v934_v60 = vld [vmem:[#allocation2 + $0x138] sm:$0xff] }
  0x7e   : > { %v1198_v39 = vadd.f32 %v1166_v43, %v1098_v24  ;;  %v999_v55 = vadd.f32 %v967_v30, %v898_v29  ;;  %v1167_v48 = vmul.f32 %v1656_v0, %v1131_v56  ;;  %v867_v19 = vmul.f32 %v1130_v6, %v1645_v54  ;;  %v1034_v30 = vld [vmem:[#allocation2 + $0x139] sm:$0xff] }
  0x7f   : > { %v799_v28 = vadd.f32 %v767_v8, %v699_v63  ;;  %v600_v15 = vadd.f32 %v568_v27, %v500_v47  ;;  %v668_v53 = vmul.f32 %v931_v46, %v1635_v45  ;;  %v401_v7 = vmul.f32 %v930_v3, %v1607_v32  ;;  %v1033_v3 = vld [vmem:[#allocation2 + $0x129] sm:$0xff]  ;;  %v1134_v63 = vld [vmem:[#allocation2 + $0x13a] sm:$0xff] }
  0x80   : > { %v1237_v17 = vadd.f32 %v1703_v57, %v1198_v39  ;;  %v1099_v21 = vadd.f32 %v1067_v20, %v999_v55  ;;  %v968_v9 = vmul.f32 %v1649_v58, %v932_v10  ;;  %v469_v33 = vmul.f32 %v1030_v11, %v1618_v37 }
  0x81   : > { %v899_v51 = vadd.f32 %v867_v19, %v799_v28  ;;  %v1068_v62 = vmul.f32 %v1651_v59, %v1032_v61  ;;  %v700_v23 = vadd.f32 %v668_v53, %v600_v15  ;;  %v768_v12 = vmul.f32 %v1031_v26, %v1640_v50 }
  0x82   : > { %1269 = vst.msk [vmem:[%s1715_s30 + $0x90] sm:$0xff] %vm233_vm0, %v1237_v17  ;;  %v1199_v34 = vadd.f32 %v1167_v48, %v1099_v21  ;;  %v1168_v35 = vmul.f32 %v1656_v0, %v1132_v13  ;;  %v501_v5 = vadd.f32 %v469_v33, %v401_v7  ;;  %v569_v16 = vmul.f32 %v1130_v6, %v1621_v38  ;;  %v935_v21 = vld [vmem:[#allocation2 + $0x140] sm:$0xff] }
  0x83   : > { %v1000_v1 = vadd.f32 %v968_v9, %v899_v51  ;;  %v800_v44 = vadd.f32 %v768_v12, %v700_v23  ;;  %v868_v11 = vmul.f32 %v1131_v56, %v1645_v54  ;;  %v669_v40 = vmul.f32 %v932_v10, %v1635_v45 }
  0x84   : > { %v1238_v41 = vadd.f32 %v1703_v57, %v1199_v34  ;;  %v601_v43 = vadd.f32 %v569_v16, %v501_v5  ;;  %v402_v25 = vmul.f32 %v931_v46, %v1607_v32  ;;  %v470_v2 = vmul.f32 %v1031_v26, %v1618_v37  ;;  %v1135_v34 = vld [vmem:[#allocation2 + $0x142] sm:$0xff] }
  0x85   : > { %v1100_v14 = vadd.f32 %v1068_v62, %v1000_v1  ;;  %v900_v22 = vadd.f32 %v868_v11, %v800_v44  ;;  %v969_v4 = vmul.f32 %v1649_v58, %v933_v36  ;;  %v1069_v6 = vmul.f32 %v1651_v59, %v1033_v3 }
  0x86   : > { %1270 = vst.msk [vmem:[%s1715_s30 + $0x98] sm:$0xff] %vm233_vm0, %v1238_v41  ;;  %v701_v49 = vadd.f32 %v669_v40, %v601_v43  ;;  %v769_v52 = vmul.f32 %v1032_v61, %v1640_v50  ;;  %v502_v18 = vadd.f32 %v470_v2, %v402_v25  ;;  %v570_v31 = vmul.f32 %v1131_v56, %v1621_v38  ;;  %v936_v43 = vld [vmem:[#allocation2 + $0x150] sm:$0xff] }
  0x87   : > { %v1200_v24 = vadd.f32 %v1168_v35, %v1100_v14  ;;  %v1001_v29 = vadd.f32 %v969_v4, %v900_v22  ;;  %v1169_v46 = vmul.f32 %v1656_v0, %v1133_v42  ;;  %v869_v26 = vmul.f32 %v1132_v13, %v1645_v54  ;;  %v1036_v4 = vld [vmem:[#allocation2 + $0x151] sm:$0xff] }
  0x88   : > { %v801_v20 = vadd.f32 %v769_v52, %v701_v49  ;;  %v602_v8 = vadd.f32 %v570_v31, %v502_v18  ;;  %v670_v47 = vmul.f32 %v933_v36, %v1635_v45  ;;  %v403_v27 = vmul.f32 %v932_v10, %v1607_v32  ;;  %v1035_v10 = vld [vmem:[#allocation2 + $0x141] sm:$0xff]  ;;  %v1990_v49 = vld [vmem:[#allocation2 + $0x152] sm:$0xff] }
  0x89   : > { %v1239_v39 = vadd.f32 %v1703_v57, %v1200_v24  ;;  %v1101_v55 = vadd.f32 %v1069_v6, %v1001_v29  ;;  %v970_v56 = vmul.f32 %v1649_v58, %v934_v60  ;;  %v471_v48 = vmul.f32 %v1032_v61, %v1618_v37 }
  0x8a   : > { %v901_v19 = vadd.f32 %v869_v26, %v801_v20  ;;  %v1070_v28 = vmul.f32 %v1651_v59, %v1034_v30  ;;  %v702_v15 = vadd.f32 %v670_v47, %v602_v8  ;;  %v770_v53 = vmul.f32 %v1033_v3, %v1640_v50 }
  0x8b   : > { %1271 = vst.msk [vmem:[%s1715_s30 + $0xa0] sm:$0xff] %vm233_vm0, %v1239_v39  ;;  %v1201_v7 = vadd.f32 %v1169_v46, %v1101_v55  ;;  %v1170_v17 = vmul.f32 %v1656_v0, %v1134_v63  ;;  %v503_v9 = vadd.f32 %v471_v48, %v403_v27  ;;  %v571_v33 = vmul.f32 %v1132_v13, %v1621_v38  ;;  %v1037_v55 = vld [vmem:[#allocation2 + $0x159] sm:$0xff] }
  0x8c   : > { %v1002_v51 = vadd.f32 %v970_v56, %v901_v19  ;;  %v802_v62 = vadd.f32 %v770_v53, %v702_v15  ;;  %v870_v61 = vmul.f32 %v1133_v42, %v1645_v54  ;;  %v671_v23 = vmul.f32 %v934_v60, %v1635_v45 }
  0x8d   : > { %v1240_v12 = vadd.f32 %v1703_v57, %v1201_v7  ;;  %v603_v35 = vadd.f32 %v571_v33, %v503_v9  ;;  %v404_v5 = vmul.f32 %v933_v36, %v1607_v32  ;;  %v472_v16 = vmul.f32 %v1033_v3, %v1618_v37  ;;  %v1137_v7 = vld [vmem:[#allocation2 + $0x15a] sm:$0xff] }
  0x8e   : > { %v1102_v1 = vadd.f32 %v1070_v28, %v1002_v51  ;;  %v902_v44 = vadd.f32 %v870_v61, %v802_v62  ;;  %v971_v11 = vmul.f32 %v1649_v58, %v935_v21  ;;  %v1071_v13 = vmul.f32 %v1651_v59, %v1035_v10 }
  0x8f   : > { %1272 = vst.msk [vmem:[%s1715_s30 + $0xa8] sm:$0xff] %vm233_vm0, %v1240_v12  ;;  %v703_v40 = vadd.f32 %v671_v23, %v603_v35  ;;  %v771_v41 = vmul.f32 %v1034_v30, %v1640_v50  ;;  %v504_v25 = vadd.f32 %v472_v16, %v404_v5  ;;  %v572_v2 = vmul.f32 %v1133_v42, %v1621_v38  ;;  %v938_v35 = vld [vmem:[#allocation2 + $0x168] sm:$0xff] }
  0x90   : > { %v1202_v14 = vadd.f32 %v1170_v17, %v1102_v1  ;;  %v1003_v22 = vadd.f32 %v971_v11, %v902_v44  ;;  %v1171_v36 = vmul.f32 %v1656_v0, %v1135_v34  ;;  %v871_v3 = vmul.f32 %v1134_v63, %v1645_v54  ;;  %v1038_v44 = vld [vmem:[#allocation2 + $0x169] sm:$0xff] }
  0x91   : > { %v803_v6 = vadd.f32 %v771_v41, %v703_v40  ;;  %v604_v52 = vadd.f32 %v572_v2, %v504_v25  ;;  %v672_v18 = vmul.f32 %v935_v21, %v1635_v45  ;;  %v405_v31 = vmul.f32 %v934_v60, %v1607_v32  ;;  %v937_v60 = vld [vmem:[#allocation2 + $0x158] sm:$0xff] }
  0x92   : > { %v1241_v24 = vadd.f32 %v1703_v57, %v1202_v14  ;;  %v1103_v29 = vadd.f32 %v1071_v13, %v1003_v22  ;;  %v972_v42 = vmul.f32 %v1649_v58, %v936_v43  ;;  %v473_v46 = vmul.f32 %v1034_v30, %v1618_v37  ;;  %v1138_v13 = vld [vmem:[#allocation2 + $0x16a] sm:$0xff] }
  0x93   : > { %v903_v26 = vadd.f32 %v871_v3, %v803_v6  ;;  %v1072_v20 = vmul.f32 %v1651_v59, %v1036_v4  ;;  %v704_v8 = vadd.f32 %v672_v18, %v604_v52  ;;  %v772_v47 = vmul.f32 %v1035_v10, %v1640_v50 }
  0x94   : > { %1273 = vst.msk [vmem:[%s1715_s30 + $0xb0] sm:$0xff] %vm233_vm0, %v1241_v24  ;;  %v1203_v27 = vadd.f32 %v1171_v36, %v1103_v29  ;;  %v1172_v39 = vmul.f32 %v1656_v0, %v1990_v49  ;;  %v505_v56 = vadd.f32 %v473_v46, %v405_v31  ;;  %v573_v48 = vmul.f32 %v1134_v63, %v1621_v38  ;;  %v939_v24 = vld [vmem:[#allocation2 + $0x170] sm:$0xff] }
  0x95   : > { %v1004_v19 = vadd.f32 %v972_v42, %v903_v26  ;;  %v804_v30 = vadd.f32 %v772_v47, %v704_v8  ;;  %v872_v28 = vmul.f32 %v1135_v34, %v1645_v54  ;;  %v673_v15 = vmul.f32 %v936_v43, %v1635_v45  ;;  %v1039_v29 = vld [vmem:[#allocation2 + $0x171] sm:$0xff] }
  0x96   : > { %v1242_v53 = vadd.f32 %v1703_v57, %v1203_v27  ;;  %v605_v17 = vadd.f32 %v573_v48, %v505_v56  ;;  %v406_v9 = vmul.f32 %v935_v21, %v1607_v32  ;;  %v474_v33 = vmul.f32 %v1035_v10, %v1618_v37  ;;  %v1139_v27 = vld [vmem:[#allocation2 + $0x172] sm:$0xff] }
  0x97   : > { %v1104_v51 = vadd.f32 %v1072_v20, %v1004_v19  ;;  %v904_v62 = vadd.f32 %v872_v28, %v804_v30  ;;  %v973_v61 = vmul.f32 %v1649_v58, %v937_v60  ;;  %v1073_v63 = vmul.f32 %v1651_v59, %v1037_v55 }
  0x98   : > { %1274 = vst.msk [vmem:[%s1715_s30 + $0xb8] sm:$0xff] %vm233_vm0, %v1242_v53  ;;  %v705_v23 = vadd.f32 %v673_v15, %v605_v17  ;;  %v773_v12 = vmul.f32 %v1036_v4, %v1640_v50  ;;  %v506_v5 = vadd.f32 %v474_v33, %v406_v9  ;;  %v574_v57 = vmul.f32 %v1135_v34, %v1621_v38  ;;  %v2023_v34 = vld [vmem:[%s2104_s2] ss:$0 sm:$0xff] }
  0x99   : > { %v1204_v16 = vadd.f32 %v1172_v39, %v1104_v51  ;;  %v1005_v1 = vadd.f32 %v973_v61, %v904_v62  ;;  %v1173_v21 = vmul.f32 %v1656_v0, %v1137_v7  ;;  %v873_v10 = vmul.f32 %v1990_v49, %v1645_v54  ;;  %v940_v17 = vld [vmem:[#allocation2 + $0x180] sm:$0xff] }
  0x9a   : > { %v805_v11 = vadd.f32 %v773_v12, %v705_v23  ;;  %v606_v40 = vadd.f32 %v574_v57, %v506_v5  ;;  %v674_v41 = vmul.f32 %v937_v60, %v1635_v45  ;;  %v407_v25 = vmul.f32 %v936_v43, %v1607_v32  ;;  %v1040_v61 = vld [vmem:[#allocation2 + $0x181] sm:$0xff] }
  0x9b   : > { %v1243_v2 = vadd.f32 %v2023_v34, %v1204_v16  ;;  %v1105_v14 = vadd.f32 %v1073_v63, %v1005_v1  ;;  %v974_v22 = vmul.f32 %v1649_v58, %v938_v35  ;;  %v475_v36 = vmul.f32 %v1036_v4, %v1618_v37 }
  0x9c   : > { %v905_v3 = vadd.f32 %v873_v10, %v805_v11  ;;  %v1074_v6 = vmul.f32 %v1651_v59, %v1038_v44  ;;  %v706_v52 = vadd.f32 %v674_v41, %v606_v40  ;;  %v774_v18 = vmul.f32 %v1037_v55, %v1640_v50 }
  0x9d   : > { %1275 = vst.msk [vmem:[%s1715_s30 + $0xc0] sm:$0xff] %vm233_vm0, %v1243_v2  ;;  %v1205_v43 = vadd.f32 %v1173_v21, %v1105_v14  ;;  %v1174_v31 = vmul.f32 %v1656_v0, %v1138_v13  ;;  %v507_v42 = vadd.f32 %v475_v36, %v407_v25  ;;  %v575_v46 = vmul.f32 %v1990_v49, %v1621_v38  ;;  %v941_v2 = vld [vmem:[#allocation2 + $0x188] sm:$0xff] }
  0x9e   : > { %v1006_v26 = vadd.f32 %v974_v22, %v905_v3  ;;  %v806_v4 = vadd.f32 %v774_v18, %v706_v52  ;;  %v874_v20 = vmul.f32 %v1137_v7, %v1645_v54  ;;  %v675_v8 = vmul.f32 %v938_v35, %v1635_v45  ;;  %v1041_v18 = vld [vmem:[#allocation2 + $0x189] sm:$0xff] }
  0x9f   : > { %v1244_v47 = vadd.f32 %v2023_v34, %v1205_v43  ;;  %v607_v39 = vadd.f32 %v575_v46, %v507_v42  ;;  %v408_v56 = vmul.f32 %v937_v60, %v1607_v32  ;;  %v476_v48 = vmul.f32 %v1037_v55, %v1618_v37 }
  0xa0   : > { %v1106_v19 = vadd.f32 %v1074_v6, %v1006_v26  ;;  %v906_v30 = vadd.f32 %v874_v20, %v806_v4  ;;  %v975_v28 = vmul.f32 %v1649_v58, %v939_v24  ;;  %v1075_v49 = vmul.f32 %v1651_v59, %v1039_v29  ;;  %v942_v20 = vld [vmem:[#allocation2 + $0x198] sm:$0xff] }
  0xa1   : > { %1276 = vst.msk [vmem:[%s1715_s30 + $0xc8] sm:$0xff] %vm233_vm0, %v1244_v47  ;;  %v707_v15 = vadd.f32 %v675_v8, %v607_v39  ;;  %v775_v53 = vmul.f32 %v1038_v44, %v1640_v50  ;;  %v508_v9 = vadd.f32 %v476_v48, %v408_v56  ;;  %v576_v33 = vmul.f32 %v1137_v7, %v1621_v38  ;;  %v1140_v7 = vld [vmem:[#allocation2 + $0x182] sm:$0xff]  ;;  %v1141_v8 = vld [vmem:[#allocation2 + $0x18a] sm:$0xff] }
  0xa2   : > { %v1206_v51 = vadd.f32 %v1174_v31, %v1106_v19  ;;  %v1007_v62 = vadd.f32 %v975_v28, %v906_v30  ;;  %v1175_v60 = vmul.f32 %v1656_v0, %v1139_v27  ;;  %v875_v55 = vmul.f32 %v1138_v13, %v1645_v54  ;;  %v1042_v28 = vld [vmem:[#allocation2 + $0x199] sm:$0xff] }
  0xa3   : > { %v807_v63 = vadd.f32 %v775_v53, %v707_v15  ;;  %v608_v23 = vadd.f32 %v576_v33, %v508_v9  ;;  %v676_v12 = vmul.f32 %v939_v24, %v1635_v45  ;;  %v409_v5 = vmul.f32 %v938_v35, %v1607_v32 }
  0xa4   : > { %v1245_v57 = vadd.f32 %v2023_v34, %v1206_v51  ;;  %v1107_v16 = vadd.f32 %v1075_v49, %v1007_v62  ;;  %v976_v1 = vmul.f32 %v1649_v58, %v940_v17  ;;  %v477_v21 = vmul.f32 %v1038_v44, %v1618_v37  ;;  %v1142_v62 = vld [vmem:[#allocation2 + $0x19a] sm:$0xff] }
  0xa5   : > { %v907_v10 = vadd.f32 %v875_v55, %v807_v63  ;;  %v1076_v11 = vmul.f32 %v1651_v59, %v1040_v61  ;;  %v708_v40 = vadd.f32 %v676_v12, %v608_v23  ;;  %v776_v41 = vmul.f32 %v1039_v29, %v1640_v50  ;;  %v1043_v12 = vld [vmem:[#allocation2 + $0x1a1] sm:$0xff] }
  0xa6   : > { %1277 = vst.msk [vmem:[%s1715_s30 + $0xd0] sm:$0xff] %vm233_vm0, %v1245_v57  ;;  %v1207_v25 = vadd.f32 %v1175_v60, %v1107_v16  ;;  %v509_v14 = vadd.f32 %v477_v21, %v409_v5  ;;  %v577_v35 = vmul.f32 %v1138_v13, %v1621_v38  ;;  %v677_v22 = vmul.f32 %v940_v17, %v1635_v45  ;;  %v1143_v16 = vld [vmem:[#allocation2 + $0x1a2] sm:$0xff] }
  0xa7   : > { %v1008_v36 = vadd.f32 %v976_v1, %v907_v10  ;;  %v1176_v3 = vmul.f32 %v1656_v0, %v1140_v7  ;;  %v808_v44 = vadd.f32 %v776_v41, %v708_v40  ;;  %v876_v6 = vmul.f32 %v1139_v27, %v1645_v54 }
  0xa8   : > { %v1246_v52 = vadd.f32 %v2023_v34, %v1207_v25  ;;  %v609_v43 = vadd.f32 %v577_v35, %v509_v14  ;;  %v410_v31 = vmul.f32 %v939_v24, %v1607_v32  ;;  %v478_v42 = vmul.f32 %v1039_v29, %v1618_v37 }
  0xa9   : > { %v1108_v46 = vadd.f32 %v1076_v11, %v1008_v36  ;;  %v908_v26 = vadd.f32 %v876_v6, %v808_v44  ;;  %v977_v13 = vmul.f32 %v1649_v58, %v941_v2  ;;  %v777_v4 = vmul.f32 %v1040_v61, %v1640_v50 }
  0xaa   : > { %1278 = vst.msk [vmem:[%s1715_s30 + $0xd8] sm:$0xff] %vm233_vm0, %v1246_v52  ;;  %v709_v47 = vadd.f32 %v677_v22, %v609_v43  ;;  %v510_v39 = vadd.f32 %v478_v42, %v410_v31  ;;  %v578_v56 = vmul.f32 %v1139_v27, %v1621_v38  ;;  %v678_v48 = vmul.f32 %v941_v2, %v1635_v45  ;;  %v943_v38 = vld [vmem:[#allocation2 + $0x1a0] sm:$0xff] }
  0xab   : > { %v1208_v32 = vadd.f32 %v1176_v3, %v1108_v46  ;;  %v1009_v24 = vadd.f32 %v977_v13, %v908_v26  ;;  %v1077_v37 = vmul.f32 %v1651_v59, %v1041_v18  ;;  %v877_v19 = vmul.f32 %v1140_v7, %v1645_v54 }
  0xac   : > { %v809_v29 = vadd.f32 %v777_v4, %v709_v47  ;;  %v978_v30 = vmul.f32 %v1649_v58, %v942_v20  ;;  %v610_v49 = vadd.f32 %v578_v56, %v510_v39  ;;  %v1177_v17 = vmul.f32 %v1656_v0, %v1141_v8 }
  0xad   : > { %v1247_v15 = vadd.f32 %v2023_v34, %v1208_v32  ;;  %v1109_v53 = vadd.f32 %v1077_v37, %v1009_v24  ;;  %v778_v9 = vmul.f32 %v1041_v18, %v1640_v50  ;;  %v1078_v51 = vmul.f32 %v1651_v59, %v1042_v28 }
  0xae   : > { %v909_v27 = vadd.f32 %v877_v19, %v809_v29  ;;  %v710_v45 = vadd.f32 %v678_v48, %v610_v49  ;;  %v878_v61 = vmul.f32 %v1141_v8, %v1645_v54  ;;  %v979_v63 = vmul.f32 %v1649_v58, %v943_v38 }
  0xaf   : > { %1279 = vst.msk [vmem:[%s1715_s30 + $0xe0] sm:$0xff] %vm233_vm0, %v1247_v15  ;;  %v1209_v33 = vadd.f32 %v1177_v17, %v1109_v53  ;;  %v1178_v50 = vmul.f32 %v1656_v0, %v1142_v62  ;;  %v1079_v21 = vmul.f32 %v1651_v59, %v1043_v12  ;;  %v1179_v58 = vmul.f32 %v1656_v0, %v1143_v16 }
  0xb0   : > { %v1010_v60 = vadd.f32 %v978_v30, %v909_v27  ;;  %v810_v55 = vadd.f32 %v778_v9, %v710_v45 }
  0xb1   : > { %v1248_v23 = vadd.f32 %v2023_v34, %v1209_v33 }
  0xb2   : > { %v1110_v5 = vadd.f32 %v1078_v51, %v1010_v60  ;;  %v910_v57 = vadd.f32 %v878_v61, %v810_v55 }
  0xb3   : > { %1280 = vst.msk [vmem:[%s1715_s30 + $0xe8] sm:$0xff] %vm233_vm0, %v1248_v23 }
  0xb4   : > { %v1210_v1 = vadd.f32 %v1178_v50, %v1110_v5  ;;  %v1011_v7 = vadd.f32 %v979_v63, %v910_v57 }
  0xb6   : > { %v1249_v10 = vadd.f32 %v2023_v34, %v1210_v1  ;;  %v1111_v54 = vadd.f32 %v1079_v21, %v1011_v7 }
  0xb8   : > { %1281 = vst.msk [vmem:[%s1715_s30 + $0xf0] sm:$0xff] %vm233_vm0, %v1249_v10  ;;  %v1211_v11 = vadd.f32 %v1179_v58, %v1111_v54 }
  0xba   : > { %v1250_v40 = vadd.f32 %v2023_v34, %v1211_v11 }
  0xbc   : > { %1282 = vst.msk [vmem:[%s1715_s30 + $0xf8] sm:$0xff] %vm233_vm0, %v1250_v40 }
  0xbd PF: > { %s13_s14 = sadd.s32 1, %s1458_s14   ;;  %s2106_s12 = smov %s1454_s13 }
  0xbe   : > { %p10_p5 = scmp.ge.s32.totalorder %s13_s14, 4   ;;  %s2107_s13 = smov %s2109_s15 }
  0xc0   :  { %12 = sbr.rel (!%p10_p5) target bundleno = 2 (0x2), region = 71 }

</bundles_post_ra>
